<compile_context>
chip_gen: v5e
topology: v5e:2x2
jax: 0.10.0
libtpu: 0.0.40
codegen_flags: <defaults>
</compile_context>

<pallas_src>
import functools

import numpy as np
import jax
import jax.numpy as jnp
from jax.experimental import pallas as pl
from jax.experimental.pallas import tpu as pltpu

LANE = 128
N_ALIGN = 256                        # node padding granularity (not lcm(tm,tk))
MAX_TILE = 2048                      # bf16 Ahat tile cap: 2 x 8 MiB double buffer
_Y_RESIDENT_BYTES = 8 * 1024 * 1024  # keep Y fully VMEM-resident below this


def _round_up(x, m):
    return ((x + m - 1) // m) * m


def _pad2d(x, rows, cols):
    r, c = x.shape
    return jnp.pad(x, ((0, rows - r), (0, cols - c)))


def _vmem_limit_bytes():
    """Generation-aware scoped-VMEM budget (v5e/v6e 128 MiB, v7x 64 MiB/TC)."""
    cap = None
    try:
        cap = getattr(pltpu.get_tpu_info(), "vmem_capacity_bytes", None)
    except Exception:
        cap = None
    if not cap:
        cap = 64 * 1024 * 1024       # conservative fallback (v7x per-TC VMEM)
    # 48 MiB ceiling: plenty for the <=28 MiB working set, safe on every gen.
    return int(min(cap * 3 // 4, 48 * 1024 * 1024))


_VMEM_LIMIT = _vmem_limit_bytes()


def _pick_tiles(n_pad, vmem_limit):
    """Pick (tm, tk): largest multiples of N_ALIGN dividing n_pad such that the
    double-buffered bf16 Ahat tile fits ~60% of the VMEM budget (cap MAX_TILE).
    tm is kept <= n_pad // 2 when possible so the 'parallel' row axis has >= 2
    tiles (v7x megacore split)."""
    budget = int(vmem_limit * 0.6)
    cap = N_ALIGN
    while cap < MAX_TILE and 2 * (2 * cap) * (2 * cap) * 2 <= budget:
        cap *= 2

    def largest_divisor(limit):
        best = N_ALIGN
        t = N_ALIGN
        while t <= limit:
            if n_pad % t == 0:
                best = t
            t += N_ALIGN
        return best

    tk = largest_divisor(min(cap, n_pad))
    tm = largest_divisor(min(cap, max(N_ALIGN, n_pad // 2)))
    return tm, tk


# ---------------------------------------------------------------------------
# Kernel body
# ---------------------------------------------------------------------------
def _gcn_layer_kernel(a_ref, y_ref, w_ref, b_ref, o_ref, acc_ref, *,
                      apply_relu, y_resident, tk):
    """acc[i] = sum_k Ahat[i,k] @ Y[k];  out[i] = acc[i] @ W + b (+ ReLU)."""
    k = pl.program_id(1)

    @pl.when(k == 0)
    def _():
        acc_ref[...] = jnp.zeros_like(acc_ref)

    if y_resident:
        # Y was DMA'd once (constant index_map) and stays VMEM-resident;
        # slice out the k-th row block here.
        start = pl.multiple_of(k * tk, N_ALIGN)
        y = y_ref[pl.ds(start, tk), :]
    else:
        y = y_ref[...]

    acc_ref[...] += jnp.dot(a_ref[...], y, preferred_element_type=jnp.float32)

    @pl.when(k == pl.num_programs(1) - 1)
    def _():
        # Fused dense transform + bias (+ ReLU) on the f32 accumulator: runs
        # once per row tile, keeps accumulated precision (no bf16 round-trip).
        h = jnp.dot(acc_ref[...], w_ref[...],
                    preferred_element_type=jnp.float32) + b_ref[...]
        if apply_relu:
            h = jnp.maximum(h, 0.0)
        o_ref[...] = h.astype(o_ref.dtype)


# ---------------------------------------------------------------------------
# pallas_call wrapper
# ---------------------------------------------------------------------------
def _gcn_layer(ahat_p, y_p, w_p, b_p, *, apply_relu, out_dtype, tm, tk):
    n_pad = ahat_p.shape[0]
    f = y_p.shape[1]
    f_out = w_p.shape[1]
    grid = (n_pad // tm, n_pad // tk)

    # Keep Y fully VMEM-resident (single DMA) when small; otherwise stream a
    # (tk, f) block per reduction step.
    y_resident = 2 * y_p.size * y_p.dtype.itemsize <= _Y_RESIDENT_BYTES

    a_spec = pl.BlockSpec((tm, tk), lambda i, k: (i, k))
    if y_resident:
        y_spec = pl.BlockSpec((n_pad, f), lambda i, k: (0, 0))
    else:
        y_spec = pl.BlockSpec((tk, f), lambda i, k: (k, 0))
    w_spec = pl.BlockSpec((f, f_out), lambda i, k: (0, 0))
    b_spec = pl.BlockSpec((1, f_out), lambda i, k: (0, 0))
    o_spec = pl.BlockSpec((tm, f_out), lambda i, k: (i, 0))

    kernel = functools.partial(_gcn_layer_kernel, apply_relu=apply_relu,
                               y_resident=y_resident, tk=tk)

    y_bytes = y_p.size * y_p.dtype.itemsize
    cost = pl.CostEstimate(
        flops=2 * n_pad * n_pad * f + 2 * n_pad * f * f_out,
        transcendentals=0,
        bytes_accessed=int(
            ahat_p.size * ahat_p.dtype.itemsize
            + (y_bytes if y_resident else grid[0] * y_bytes)
            + w_p.size * w_p.dtype.itemsize
            + n_pad * f_out * np.dtype(out_dtype).itemsize),
    )

    return pl.pallas_call(
        kernel,
        out_shape=jax.ShapeDtypeStruct((n_pad, f_out), out_dtype),
        grid_spec=pltpu.PrefetchScalarGridSpec(
            num_scalar_prefetch=0,
            grid=grid,
            in_specs=[a_spec, y_spec, w_spec, b_spec],
            out_specs=o_spec,
            scratch_shapes=[pltpu.VMEM((tm, f), jnp.float32)],
        ),
        compiler_params=pltpu.CompilerParams(
            # Row tiles are independent -> "parallel" (split across the two
            # TCs on v7x); the k reduction carries the accumulator ->
            # "arbitrary" (must be last).
            dimension_semantics=("parallel", "arbitrary"),
            vmem_limit_bytes=_VMEM_LIMIT,
        ),
        cost_estimate=cost,
    )(ahat_p, y_p, w_p, b_p)


# ---------------------------------------------------------------------------
# Forward pass + (hoisted) graph preprocessing
# ---------------------------------------------------------------------------
def normalized_adjacency(adj):
    """Symmetric normalization Ahat = D^{-1/2} A D^{-1/2} (norm='both')."""
    deg = jnp.sum(adj, axis=1)
    d_inv_sqrt = jnp.where(deg > 0, 1.0 / jnp.sqrt(deg), 0.0)
    return adj * d_inv_sqrt[:, None] * d_inv_sqrt[None, :]


def pad_adjacency(ahat, n_align=N_ALIGN):
    """Per-graph preprocessing, hoisted out of the forward pass: zero-pad the
    normalized adjacency to a multiple of n_align and cast to bf16 once."""
    n = ahat.shape[0]
    n_pad = _round_up(n, n_align)
    return _pad2d(ahat, n_pad, n_pad).astype(jnp.bfloat16)


def gcn_forward(ahat_p, x, params):
    """2-layer GCN forward on a pre-normalized, pre-padded bf16 adjacency.
    Returns (N, num_classes) float32."""
    w1, b1, w2, b2 = params
    n, in_feats = x.shape
    h_feats = w1.shape[1]
    n_classes = w2.shape[1]
    n_pad = ahat_p.shape[0]

    fi_pad = _round_up(in_feats, LANE)
    fh_pad = _round_up(h_feats, LANE)
    fc_pad = _round_up(n_classes, LANE)

    tm, tk = _pick_tiles(n_pad, _VMEM_LIMIT)

    # Lane-dense, tile-aligned operands.  Big MXU/DMA operand (features) in
    # bf16; the tiny W/b stay f32 so the fused transform keeps full precision.
    x_p = _pad2d(x, n_pad, fi_pad).astype(jnp.bfloat16)
    w1_p = _pad2d(w1, fi_pad, fh_pad).astype(jnp.float32)
    b1_p = _pad2d(b1.reshape(1, -1), 1, fh_pad).astype(jnp.float32)
    w2_p = _pad2d(w2, fh_pad, fc_pad).astype(jnp.float32)
    b2_p = _pad2d(b2.reshape(1, -1), 1, fc_pad).astype(jnp.float32)

    # Layer 1 (in -> hidden): aggregate-first, fused W1 + bias + ReLU.
    h = _gcn_layer(ahat_p, x_p, w1_p, b1_p, apply_relu=True,
                   out_dtype=jnp.bfloat16, tm=tm, tk=tk)
    # Layer 2 (hidden -> classes): same fused kernel.  After lane padding both
    # widths are 128 lanes, so a separate transform-first pass would only add
    # an extra HBM round-trip.
    out = _gcn_layer(ahat_p, h, w2_p, b2_p, apply_relu=False,
                     out_dtype=jnp.float32, tm=tm, tk=tk)
    return out[:n, :n_classes]


def gcn_reference(ahat, x, params):
    """Pure-JAX reference mirroring the kernel numerics: bf16 aggregation with
    f32 accumulation, f32 fused transform."""
    w1, b1, w2, b2 = params
    bf = jnp.bfloat16
    hp = jax.lax.Precision.HIGHEST
    a_bf = ahat.astype(bf)
    # Layer 1.
    acc1 = jnp.dot(a_bf, x.astype(bf), preferred_element_type=jnp.float32)
    h = jnp.dot(acc1, w1, precision=hp) + b1
    h = jnp.maximum(h, 0.0).astype(bf)
    # Layer 2.
    acc2 = jnp.dot(a_bf, h, preferred_element_type=jnp.float32)
    out = jnp.dot(acc2, w2, precision=hp) + b2
    return out


if __name__ == "__main__":
    key = jax.random.PRNGKey(0)
    k_adj, k_x, k_w1, k_w2, k_b1, k_b2 = jax.random.split(key, 6)

    num_nodes = 16
    in_feats = 8
    h_feats = 32
    num_classes = 2

    # Random undirected graph with self-loops, then symmetric normalization.
    rand = jax.random.uniform(k_adj, (num_nodes, num_nodes))
    adj = (rand + rand.T > 1.0).astype(jnp.float32)
    adj = jnp.maximum(adj, jnp.eye(num_nodes, dtype=jnp.float32))
    ahat = normalized_adjacency(adj)

    # Hoisted per-graph preprocessing (pad + bf16 cast done exactly once).
    ahat_p = jax.block_until_ready(pad_adjacency(ahat))

    # Node features.
    x = jax.random.normal(k_x, (num_nodes, in_feats), dtype=jnp.float32)

    # Glorot-style weights + small random biases.
    def glorot(k, shape):
        fan_in, fan_out = shape
        limit = jnp.sqrt(6.0 / (fan_in + fan_out))
        return jax.random.uniform(k, shape, jnp.float32, -limit, limit)

    w1 = glorot(k_w1, (in_feats, h_feats))
    b1 = 0.1 * jax.random.normal(k_b1, (h_feats,), jnp.float32)
    w2 = glorot(k_w2, (h_feats, num_classes))
    b2 = 0.1 * jax.random.normal(k_b2, (num_classes,), jnp.float32)

    params = (w1, b1, w2, b2)

    fwd = jax.jit(gcn_forward)
    out = jax.block_until_ready(fwd(ahat_p, x, params))

    ref = gcn_reference(ahat, x, params)
    assert out.shape == (num_nodes, num_classes)
    assert jnp.allclose(out, ref, atol=2e-3, rtol=1e-3), (
        f"max abs err {jnp.max(jnp.abs(out - ref))}")

    print("KERNEL_OK")
</pallas_src>

<mosaic_0001>
module attributes {stable_mosaic.version = 11 : i64} {
  func.func @_gcn_layer_kernel(%arg0: i32, %arg1: i32, %arg2: memref<256x256xbf16, #tpu.memory_space<vmem>>, %arg3: memref<256x128xbf16, #tpu.memory_space<vmem>>, %arg4: memref<128x128xf32, #tpu.memory_space<vmem>>, %arg5: memref<1x128xf32, #tpu.memory_space<vmem>>, %arg6: memref<256x128xbf16, #tpu.memory_space<vmem>>, %arg7: memref<256x128xf32, #tpu.memory_space<vmem>>) attributes {dimension_semantics = [#tpu.dimension_semantics<parallel>, #tpu.dimension_semantics<arbitrary>], iteration_bounds = array<i64: 1, 1>, scalar_prefetch = 0 : i64, scratch_operands = 1 : i64, tpu.core_type = #tpu.core_type<tc>, window_params = [{transform_indices = @transform_0, window_bounds = array<i64: 256, 256>}, {pipeline_mode = #tpu.pipeline_mode<synchronous>, transform_indices = @transform_1, window_bounds = array<i64: 256, 128>}, {pipeline_mode = #tpu.pipeline_mode<synchronous>, transform_indices = @transform_2, window_bounds = array<i64: 128, 128>}, {pipeline_mode = #tpu.pipeline_mode<synchronous>, transform_indices = @transform_3, window_bounds = array<i64: 1, 128>}, {transform_indices = @transform_4, window_bounds = array<i64: 256, 128>}]} {
    %c0_i32 = arith.constant 0 : i32
    %0 = arith.cmpi eq, %arg1, %c0_i32 : i32
    %1 = arith.extui %0 : i1 to i32
    %c0_i32_0 = arith.constant 0 : i32
    %2 = arith.cmpi ne, %1, %c0_i32_0 : i32
    scf.if %2 {
      %cst_9 = arith.constant 0.000000e+00 : f32
      %15 = vector.broadcast %cst_9 : f32 to vector<256x128xf32>
      %c0_10 = arith.constant 0 : index
      %c0_11 = arith.constant 0 : index
      %16 = vector.load %arg7[%c0_10, %c0_11] : memref<256x128xf32, #tpu.memory_space<vmem>>, vector<256x128xf32>
      tpu.vector_store %arg7[%c0_10, %c0_11], %15 {strides = array<i32>} : memref<256x128xf32, #tpu.memory_space<vmem>>, vector<256x128xf32>,
    } else {
    }
    %c256_i32 = arith.constant 256 : i32
    %3 = arith.muli %arg1, %c256_i32 : i32
    %4 = tpu.assume_multiple %3, 256 : i32
    %5 = arith.index_cast %4 : i32 to index
    %c0 = arith.constant 0 : index
    %6 = vector.load %arg3[%5, %c0] : memref<256x128xbf16, #tpu.memory_space<vmem>>, vector<256x128xbf16>
    %c0_1 = arith.constant 0 : index
    %c0_2 = arith.constant 0 : index
    %7 = vector.load %arg7[%c0_1, %c0_2] : memref<256x128xf32, #tpu.memory_space<vmem>>, vector<256x128xf32>
    %c0_3 = arith.constant 0 : index
    %c0_4 = arith.constant 0 : index
    %8 = vector.load %arg2[%c0_3, %c0_4] : memref<256x256xbf16, #tpu.memory_space<vmem>>, vector<256x256xbf16>
    %cst = arith.constant dense<0.000000e+00> : vector<256x128xf32>
    %9 = tpu.matmul %8, %6, %cst {dimension_numbers = #tpu.dot_dimension_numbers<[1], [0], [0], [1], [0, 0, 1, 1], [], []>} : vector<256x256xbf16>, vector<256x128xbf16>, vector<256x128xf32> -> vector<256x128xf32>
    %10 = arith.addf %7, %9 : vector<256x128xf32>
    %c0_5 = arith.constant 0 : index
    %c0_6 = arith.constant 0 : index
    %11 = vector.load %arg7[%c0_5, %c0_6] : memref<256x128xf32, #tpu.memory_space<vmem>>, vector<256x128xf32>
    tpu.vector_store %arg7[%c0_5, %c0_6], %10 {strides = array<i32>} : memref<256x128xf32, #tpu.memory_space<vmem>>, vector<256x128xf32>,
    %c0_i32_7 = arith.constant 0 : i32
    %12 = arith.cmpi eq, %arg1, %c0_i32_7 : i32
    %13 = arith.extui %12 : i1 to i32
    %c0_i32_8 = arith.constant 0 : i32
    %14 = arith.cmpi ne, %13, %c0_i32_8 : i32
    scf.if %14 {
      %c0_9 = arith.constant 0 : index
      %c0_10 = arith.constant 0 : index
      %15 = vector.load %arg7[%c0_9, %c0_10] : memref<256x128xf32, #tpu.memory_space<vmem>>, vector<256x128xf32>
      %c0_11 = arith.constant 0 : index
      %c0_12 = arith.constant 0 : index
      %16 = vector.load %arg4[%c0_11, %c0_12] : memref<128x128xf32, #tpu.memory_space<vmem>>, vector<128x128xf32>
      %cst_13 = arith.constant dense<0.000000e+00> : vector<256x128xf32>
      %17 = tpu.matmul %15, %16, %cst_13 {dimension_numbers = #tpu.dot_dimension_numbers<[1], [0], [0], [1], [0, 0, 1, 1], [], []>} : vector<256x128xf32>, vector<128x128xf32>, vector<256x128xf32> -> vector<256x128xf32>
      %c0_14 = arith.constant 0 : index
      %c0_15 = arith.constant 0 : index
      %18 = vector.load %arg5[%c0_14, %c0_15] : memref<1x128xf32, #tpu.memory_space<vmem>>, vector<1x128xf32>
      %19 = vector.broadcast %18 : vector<1x128xf32> to vector<256x128xf32>
      %20 = arith.addf %17, %19 : vector<256x128xf32>
      %cst_16 = arith.constant 0.000000e+00 : f32
      %21 = vector.broadcast %cst_16 : f32 to vector<256x128xf32>
      %22 = arith.maximumf %20, %21 : vector<256x128xf32>
      %23 = arith.truncf %22 : vector<256x128xf32> to vector<256x128xbf16>
      %c0_17 = arith.constant 0 : index
      %c0_18 = arith.constant 0 : index
      %24 = vector.load %arg6[%c0_17, %c0_18] : memref<256x128xbf16, #tpu.memory_space<vmem>>, vector<256x128xbf16>
      tpu.vector_store %arg6[%c0_17, %c0_18], %23 {strides = array<i32>} : memref<256x128xbf16, #tpu.memory_space<vmem>>, vector<256x128xbf16>,
    } else {
    }
    return
  }
  func.func @transform_0(%arg0: i32, %arg1: i32) -> (i32, i32) {
    %c0_i32 = arith.constant 0 : i32
    return %arg0, %arg1 : i32, i32
  }
  func.func @transform_1(%arg0: i32, %arg1: i32) -> (i32, i32) {
    %c0_i32 = arith.constant 0 : i32
    %c0_i32_0 = arith.constant 0 : i32
    %c0_i32_1 = arith.constant 0 : i32
    return %c0_i32, %c0_i32_0 : i32, i32
  }
  func.func @transform_2(%arg0: i32, %arg1: i32) -> (i32, i32) {
    %c0_i32 = arith.constant 0 : i32
    %c0_i32_0 = arith.constant 0 : i32
    %c0_i32_1 = arith.constant 0 : i32
    return %c0_i32, %c0_i32_0 : i32, i32
  }
  func.func @transform_3(%arg0: i32, %arg1: i32) -> (i32, i32) {
    %c0_i32 = arith.constant 0 : i32
    %c0_i32_0 = arith.constant 0 : i32
    %c0_i32_1 = arith.constant 0 : i32
    return %c0_i32, %c0_i32_0 : i32, i32
  }
  func.func @transform_4(%arg0: i32, %arg1: i32) -> (i32, i32) {
    %c0_i32 = arith.constant 0 : i32
    %c0_i32_0 = arith.constant 0 : i32
    return %arg0, %c0_i32 : i32, i32
  }
}

module attributes {stable_mosaic.version = 11 : i64} {
  func.func @_gcn_layer_kernel(%arg0: i32, %arg1: i32, %arg2: memref<256x256xbf16, #tpu.memory_space<vmem>>, %arg3: memref<256x128xbf16, #tpu.memory_space<vmem>>, %arg4: memref<128x128xf32, #tpu.memory_space<vmem>>, %arg5: memref<1x128xf32, #tpu.memory_space<vmem>>, %arg6: memref<256x128xf32, #tpu.memory_space<vmem>>, %arg7: memref<256x128xf32, #tpu.memory_space<vmem>>) attributes {dimension_semantics = [#tpu.dimension_semantics<parallel>, #tpu.dimension_semantics<arbitrary>], iteration_bounds = array<i64: 1, 1>, scalar_prefetch = 0 : i64, scratch_operands = 1 : i64, tpu.core_type = #tpu.core_type<tc>, window_params = [{transform_indices = @transform_0, window_bounds = array<i64: 256, 256>}, {pipeline_mode = #tpu.pipeline_mode<synchronous>, transform_indices = @transform_1, window_bounds = array<i64: 256, 128>}, {pipeline_mode = #tpu.pipeline_mode<synchronous>, transform_indices = @transform_2, window_bounds = array<i64: 128, 128>}, {pipeline_mode = #tpu.pipeline_mode<synchronous>, transform_indices = @transform_3, window_bounds = array<i64: 1, 128>}, {transform_indices = @transform_4, window_bounds = array<i64: 256, 128>}]} {
    %c0_i32 = arith.constant 0 : i32
    %0 = arith.cmpi eq, %arg1, %c0_i32 : i32
    %1 = arith.extui %0 : i1 to i32
    %c0_i32_0 = arith.constant 0 : i32
    %2 = arith.cmpi ne, %1, %c0_i32_0 : i32
    scf.if %2 {
      %cst_9 = arith.constant 0.000000e+00 : f32
      %15 = vector.broadcast %cst_9 : f32 to vector<256x128xf32>
      %c0_10 = arith.constant 0 : index
      %c0_11 = arith.constant 0 : index
      %16 = vector.load %arg7[%c0_10, %c0_11] : memref<256x128xf32, #tpu.memory_space<vmem>>, vector<256x128xf32>
      tpu.vector_store %arg7[%c0_10, %c0_11], %15 {strides = array<i32>} : memref<256x128xf32, #tpu.memory_space<vmem>>, vector<256x128xf32>,
    } else {
    }
    %c256_i32 = arith.constant 256 : i32
    %3 = arith.muli %arg1, %c256_i32 : i32
    %4 = tpu.assume_multiple %3, 256 : i32
    %5 = arith.index_cast %4 : i32 to index
    %c0 = arith.constant 0 : index
    %6 = vector.load %arg3[%5, %c0] : memref<256x128xbf16, #tpu.memory_space<vmem>>, vector<256x128xbf16>
    %c0_1 = arith.constant 0 : index
    %c0_2 = arith.constant 0 : index
    %7 = vector.load %arg7[%c0_1, %c0_2] : memref<256x128xf32, #tpu.memory_space<vmem>>, vector<256x128xf32>
    %c0_3 = arith.constant 0 : index
    %c0_4 = arith.constant 0 : index
    %8 = vector.load %arg2[%c0_3, %c0_4] : memref<256x256xbf16, #tpu.memory_space<vmem>>, vector<256x256xbf16>
    %cst = arith.constant dense<0.000000e+00> : vector<256x128xf32>
    %9 = tpu.matmul %8, %6, %cst {dimension_numbers = #tpu.dot_dimension_numbers<[1], [0], [0], [1], [0, 0, 1, 1], [], []>} : vector<256x256xbf16>, vector<256x128xbf16>, vector<256x128xf32> -> vector<256x128xf32>
    %10 = arith.addf %7, %9 : vector<256x128xf32>
    %c0_5 = arith.constant 0 : index
    %c0_6 = arith.constant 0 : index
    %11 = vector.load %arg7[%c0_5, %c0_6] : memref<256x128xf32, #tpu.memory_space<vmem>>, vector<256x128xf32>
    tpu.vector_store %arg7[%c0_5, %c0_6], %10 {strides = array<i32>} : memref<256x128xf32, #tpu.memory_space<vmem>>, vector<256x128xf32>,
    %c0_i32_7 = arith.constant 0 : i32
    %12 = arith.cmpi eq, %arg1, %c0_i32_7 : i32
    %13 = arith.extui %12 : i1 to i32
    %c0_i32_8 = arith.constant 0 : i32
    %14 = arith.cmpi ne, %13, %c0_i32_8 : i32
    scf.if %14 {
      %c0_9 = arith.constant 0 : index
      %c0_10 = arith.constant 0 : index
      %15 = vector.load %arg7[%c0_9, %c0_10] : memref<256x128xf32, #tpu.memory_space<vmem>>, vector<256x128xf32>
      %c0_11 = arith.constant 0 : index
      %c0_12 = arith.constant 0 : index
      %16 = vector.load %arg4[%c0_11, %c0_12] : memref<128x128xf32, #tpu.memory_space<vmem>>, vector<128x128xf32>
      %cst_13 = arith.constant dense<0.000000e+00> : vector<256x128xf32>
      %17 = tpu.matmul %15, %16, %cst_13 {dimension_numbers = #tpu.dot_dimension_numbers<[1], [0], [0], [1], [0, 0, 1, 1], [], []>} : vector<256x128xf32>, vector<128x128xf32>, vector<256x128xf32> -> vector<256x128xf32>
      %c0_14 = arith.constant 0 : index
      %c0_15 = arith.constant 0 : index
      %18 = vector.load %arg5[%c0_14, %c0_15] : memref<1x128xf32, #tpu.memory_space<vmem>>, vector<1x128xf32>
      %19 = vector.broadcast %18 : vector<1x128xf32> to vector<256x128xf32>
      %20 = arith.addf %17, %19 : vector<256x128xf32>
      %c0_16 = arith.constant 0 : index
      %c0_17 = arith.constant 0 : index
      %21 = vector.load %arg6[%c0_16, %c0_17] : memref<256x128xf32, #tpu.memory_space<vmem>>, vector<256x128xf32>
      tpu.vector_store %arg6[%c0_16, %c0_17], %20 {strides = array<i32>} : memref<256x128xf32, #tpu.memory_space<vmem>>, vector<256x128xf32>,
    } else {
    }
    return
  }
  func.func @transform_0(%arg0: i32, %arg1: i32) -> (i32, i32) {
    %c0_i32 = arith.constant 0 : i32
    return %arg0, %arg1 : i32, i32
  }
  func.func @transform_1(%arg0: i32, %arg1: i32) -> (i32, i32) {
    %c0_i32 = arith.constant 0 : i32
    %c0_i32_0 = arith.constant 0 : i32
    %c0_i32_1 = arith.constant 0 : i32
    return %c0_i32, %c0_i32_0 : i32, i32
  }
  func.func @transform_2(%arg0: i32, %arg1: i32) -> (i32, i32) {
    %c0_i32 = arith.constant 0 : i32
    %c0_i32_0 = arith.constant 0 : i32
    %c0_i32_1 = arith.constant 0 : i32
    return %c0_i32, %c0_i32_0 : i32, i32
  }
  func.func @transform_3(%arg0: i32, %arg1: i32) -> (i32, i32) {
    %c0_i32 = arith.constant 0 : i32
    %c0_i32_0 = arith.constant 0 : i32
    %c0_i32_1 = arith.constant 0 : i32
    return %c0_i32, %c0_i32_0 : i32, i32
  }
  func.func @transform_4(%arg0: i32, %arg1: i32) -> (i32, i32) {
    %c0_i32 = arith.constant 0 : i32
    %c0_i32_0 = arith.constant 0 : i32
    return %arg0, %c0_i32 : i32, i32
  }
}

</mosaic_0001>

<bundles_post_ra>
// kernel: gcn_forward.3
= control target key start
LH: loop header
LB: loop body
LE: loop exit
PB: predicated region body
PF: predicated region fallthrough
CT: control target
= control target key end

     0   :  { %s1583_s1 = inlined_call_operand.vmem [shape: bf16[256,128], index: 1, kind: input, shape index: {}]   ;;  %s1584_s0 = inlined_call_operand.vmem [shape: bf16[256,256], index: 0, kind: input, shape index: {}]   ;;  %s1585_s2 = inlined_call_operand.vmem [shape: f32[128,128], index: 2, kind: input, shape index: {}]   ;;  %s1586_s3 = inlined_call_operand.vmem [shape: f32[1,128], index: 3, kind: input, shape index: {}]   ;;  %s1587_s4 = inlined_call_operand.vmem [shape: f32[256,128], index: 4, kind: output, shape index: {}]  }
   0x1   :  { %v1057_v0 = vld [vmem:[%s1583_s1 + $0x38] sm:$0xff]  ;;  %v1056_v2 = vld [vmem:[%s1583_s1 + $0x30] sm:$0xff]  ;;  %v1055_v4 = vld [vmem:[%s1583_s1 + $0x28] sm:$0xff] }
   0x2   :  { %v1065_v1 = vld [vmem:[%s1583_s1 + $0x78] sm:$0xff]  ;;  %410 = vmatpush.bf16.msra.mxu0 %v1057_v0  ;;  %1098 = vmatpush.bf16.msra.mxu3 %v1057_v0  ;;  %v1064_v3 = vld [vmem:[%s1583_s1 + $0x70] sm:$0xff]  ;;  %v1063_v5 = vld [vmem:[%s1583_s1 + $0x68] sm:$0xff] }
   0x3   :  { %499 = vmatpush.bf16.msra.mxu1 %v1065_v1  ;;  %v1054_v6 = vld [vmem:[%s1583_s1 + $0x20] sm:$0xff]  ;;  %v1053_v8 = vld [vmem:[%s1583_s1 + $0x18] sm:$0xff]  ;;  %v1052_v10 = vld [vmem:[%s1583_s1 + $0x10] sm:$0xff] }
   0x4   :  { %v1062_v7 = vld [vmem:[%s1583_s1 + $0x60] sm:$0xff]  ;;  %v1061_v9 = vld [vmem:[%s1583_s1 + $0x58] sm:$0xff]  ;;  %v1060_v11 = vld [vmem:[%s1583_s1 + $0x50] sm:$0xff] }
   0x5   :  { %v1051_v12 = vld [vmem:[%s1583_s1 + $0x8] sm:$0xff]  ;;  %v1050_v14 = vld [vmem:[%s1583_s1] sm:$0xff]  ;;  %v868_v25 = vld [vmem:[%s1584_s0 + $0x10] sm:$0xf] }
   0x6   :  { %411 = vmatpush.bf16.msra.mxu0 %v1056_v2  ;;  %1099 = vmatpush.bf16.msra.mxu3 %v1056_v2  ;;  %v1059_v13 = vld [vmem:[%s1583_s1 + $0x48] sm:$0xff]  ;;  %v860_v15 = vld [vmem:[%s1584_s0] sm:$0xf]  ;;  %v1066_v20 = vld [vmem:[%s1584_s0 + $0x4] sm:$0xf] }
   0x7   :  { %500 = vmatpush.bf16.msra.mxu1 %v1064_v3  ;;  %v1067_v16 = vld [vmem:[%s1584_s0 + $0x4] sm:$0xf0]  ;;  %v956_v17 = vld [vmem:[%s1584_s0 + $0xc0] sm:$0xf]  ;;  %v862_v21 = vld [vmem:[%s1584_s0 + $0x8] sm:$0xf0] }
   0x8   :  { %v1091_v18 = vld [vmem:[%s1584_s0 + $0xc4] sm:$0xf0]  ;;  %v1058_v19 = vld [vmem:[%s1583_s1 + $0x40] sm:$0xff]  ;;  %v861_v22 = vor.u32 %v1067_v16, %v860_v15  ;;  %v865_v24 = vor.u32 %v1066_v20, %v862_v21  ;;  %v1069_v26 = vld [vmem:[%s1584_s0 + $0x14] sm:$0xf0] }
   0x9   :  { %v957_v23 = vor.u32 %v1091_v18, %v956_v17  ;;  %v964_v27 = vld [vmem:[%s1584_s0 + $0xd0] sm:$0xf]  ;;  %v1093_v28 = vld [vmem:[%s1584_s0 + $0xd4] sm:$0xf0]  ;;  %v1068_v29 = vld [vmem:[%s1584_s0 + $0x14] sm:$0xf]  ;;  %v869_v31 = vor.u32 %v1069_v26, %v868_v25 }
   0xa   :  { %412 = vmatpush.bf16.msra.mxu0 %v1055_v4  ;;  %1100 = vmatpush.bf16.msra.mxu3 %v1055_v4  ;;  %v870_v30 = vld [vmem:[%s1584_s0 + $0x18] sm:$0xf0]  ;;  %v965_v32 = vor.u32 %v1093_v28, %v964_v27  ;;  %v876_v34 = vld [vmem:[%s1584_s0 + $0x20] sm:$0xf]  ;;  %v1071_v35 = vld [vmem:[%s1584_s0 + $0x24] sm:$0xf0] }
   0xb   :  { %501 = vmatpush.bf16.msra.mxu1 %v1063_v5  ;;  %v873_v33 = vor.u32 %v1068_v29, %v870_v30  ;;  %v972_v36 = vld [vmem:[%s1584_s0 + $0xe0] sm:$0xf]  ;;  %v1095_v37 = vld [vmem:[%s1584_s0 + $0xe4] sm:$0xf0]  ;;  %v1070_v38 = vld [vmem:[%s1584_s0 + $0x24] sm:$0xf]  ;;  %v877_v40 = vor.u32 %v1071_v35, %v876_v34 }
   0xc   :  { %v878_v39 = vld [vmem:[%s1584_s0 + $0x28] sm:$0xf0]  ;;  %v973_v41 = vor.u32 %v1095_v37, %v972_v36  ;;  %v884_v43 = vld [vmem:[%s1584_s0 + $0x30] sm:$0xf]  ;;  %v1073_v44 = vld [vmem:[%s1584_s0 + $0x34] sm:$0xf0] }
   0xd   :  { %v881_v42 = vor.u32 %v1070_v38, %v878_v39  ;;  %v980_v45 = vld [vmem:[%s1584_s0 + $0xf0] sm:$0xf]  ;;  %v1097_v46 = vld [vmem:[%s1584_s0 + $0xf4] sm:$0xf0]  ;;  %v1072_v47 = vld [vmem:[%s1584_s0 + $0x34] sm:$0xf]  ;;  %v885_v49 = vor.u32 %v1073_v44, %v884_v43 }
   0xe   :  { %413 = vmatpush.bf16.msra.mxu0 %v1054_v6  ;;  %1101 = vmatpush.bf16.msra.mxu3 %v1054_v6  ;;  %v886_v48 = vld [vmem:[%s1584_s0 + $0x38] sm:$0xf0]  ;;  %v981_v50 = vor.u32 %v1097_v46, %v980_v45  ;;  %v892_v52 = vld [vmem:[%s1584_s0 + $0x40] sm:$0xf]  ;;  %v1075_v53 = vld [vmem:[%s1584_s0 + $0x44] sm:$0xf0] }
   0xf   :  { %502 = vmatpush.bf16.msra.mxu1 %v1062_v7  ;;  %v889_v51 = vor.u32 %v1072_v47, %v886_v48  ;;  %v1090_v54 = vld [vmem:[%s1584_s0 + $0xc4] sm:$0xf]  ;;  %v958_v55 = vld [vmem:[%s1584_s0 + $0xc8] sm:$0xf0]  ;;  %v893_v58 = vor.u32 %v1075_v53, %v892_v52  ;;  %v702_v61 = vld [vmem:[%s1585_s2 + $0x78] sm:$0xff] }
  0x10   :  { %v1074_v56 = vld [vmem:[%s1584_s0 + $0x44] sm:$0xf]  ;;  %v894_v57 = vld [vmem:[%s1584_s0 + $0x48] sm:$0xf0]  ;;  %v961_v59 = vor.u32 %v1090_v54, %v958_v55  ;;  %v701_v62 = vld [vmem:[%s1585_s2 + $0x70] sm:$0xff]  ;;  %707 = vmatpush.msra.mxu2 %v702_v61 }
  0x11   :  { %v897_v60 = vor.u32 %v1074_v56, %v894_v57  ;;  %v700_v63 = vld [vmem:[%s1585_s2 + $0x68] sm:$0xff]  ;;  %v699_v0 = vld [vmem:[%s1585_s2 + $0x60] sm:$0xff]  ;;  %v900_v2 = vld [vmem:[%s1584_s0 + $0x50] sm:$0xf] }
  0x12   :  { %414 = vmatpush.bf16.msra.mxu0 %v1053_v8  ;;  %1102 = vmatpush.bf16.msra.mxu3 %v1053_v8  ;;  %v1092_v4 = vld [vmem:[%s1584_s0 + $0xd4] sm:$0xf]  ;;  %v902_v8 = vld [vmem:[%s1584_s0 + $0x58] sm:$0xf0]  ;;  %v692_v16 = vld [vmem:[%s1585_s2 + $0x28] sm:$0xff] }
  0x13   :  { %503 = vmatpush.bf16.msra.mxu1 %v1061_v9  ;;  %708 = vmatpush.msra.mxu2 %v701_v62  ;;  %v697_v6 = vld [vmem:[%s1585_s2 + $0x50] sm:$0xff]  ;;  %v691_v17 = vld [vmem:[%s1585_s2 + $0x20] sm:$0xff]  ;;  %v1079_v20 = vld [vmem:[%s1584_s0 + $0x64] sm:$0xf0] }
  0x14   :  { %v693_v15 = vld [vmem:[%s1585_s2 + $0x30] sm:$0xff]  ;;  %v908_v18 = vld [vmem:[%s1584_s0 + $0x60] sm:$0xf]  ;;  %v1094_v21 = vld [vmem:[%s1584_s0 + $0xe4] sm:$0xf] }
  0x15   :  { %709 = vmatpush.msra.mxu2 %v700_v63  ;;  %v689_v25 = vld [vmem:[%s1585_s2 + $0x10] sm:$0xff]  ;;  %v909_v26 = vor.u32 %v1079_v20, %v908_v18  ;;  %v688_v29 = vld [vmem:[%s1585_s2 + $0x8] sm:$0xff]  ;;  %v687_v30 = vld [vmem:[%s1585_s2] sm:$0xff] }
  0x16   :  { %415 = vmatpush.bf16.msra.mxu0 %v1052_v10  ;;  %1103 = vmatpush.bf16.msra.mxu3 %v1052_v10  ;;  %v982_v34 = vld [vmem:[%s1584_s0 + $0xf8] sm:$0xf0]  ;;  %v1080_v35 = vld [vmem:[%s1584_s0 + $0x74] sm:$0xf]  ;;  %v926_v43 = vld [vmem:[%s1584_s0 + $0x88] sm:$0xf0] }
  0x17   :  { %504 = vmatpush.bf16.msra.mxu1 %v1060_v11  ;;  %710 = vmatpush.msra.mxu2 %v699_v0  ;;  %v918_v36 = vld [vmem:[%s1584_s0 + $0x78] sm:$0xf0]  ;;  %v932_v53 = vld [vmem:[%s1584_s0 + $0x90] sm:$0xf]  ;;  %v1085_v54 = vld [vmem:[%s1584_s0 + $0x94] sm:$0xf0] }
  0x18   :  { %v921_v39 = vor.u32 %v1080_v35, %v918_v36  ;;  %v1084_v55 = vld [vmem:[%s1584_s0 + $0x94] sm:$0xf]  ;;  %v934_v56 = vld [vmem:[%s1584_s0 + $0x98] sm:$0xf0]  ;;  %v1089_v18 = vld [vmem:[%s1584_s0 + $0xb4] sm:$0xf0] }
  0x19   :  { %v950_v20 = vld [vmem:[%s1584_s0 + $0xb8] sm:$0xf0] }
  0x1a   :  { %416 = vmatpush.bf16.msra.mxu0 %v1051_v12  ;;  %1104 = vmatpush.bf16.msra.mxu3 %v1051_v12 }
  0x1b   :  { %505 = vmatpush.bf16.msra.mxu1 %v1059_v13 }
  0x1e   :  { %417 = vmatpush.bf16.msra.mxu0 %v1050_v14  ;;  %1105 = vmatpush.bf16.msra.mxu3 %v1050_v14  ;;  %v694_v14 = vld [vmem:[%s1585_s2 + $0x38] sm:$0xff] }
  0x1f   :  { %506 = vmatpush.bf16.msra.mxu1 %v1058_v19 }
  0x21   :  { %418 = vmatmul.bf16.vlgmr.msra.gmra.mxu0 %v861_v22  ;;  %478 = vmatmul.bf16.vlgmr.msra.gmra.mxu3 %v957_v23  ;;  %v974_v22 = vld [vmem:[%s1584_s0 + $0xe8] sm:$0xf0]  ;;  %v1078_v23 = vld [vmem:[%s1584_s0 + $0x64] sm:$0xf] }
  0x22   :  { %1106 = vmatpush.bf16.msrb.mxu3 %v1065_v1  ;;  %507 = vmatmul.bf16.vlgmr.msra.gmra.mxu1 %v865_v24  ;;  %v698_v1 = vld [vmem:[%s1585_s2 + $0x58] sm:$0xff]  ;;  %v910_v24 = vld [vmem:[%s1584_s0 + $0x68] sm:$0xf0]  ;;  %v977_v27 = vor.u32 %v1094_v21, %v974_v22 }
  0x23   :  { %711 = vmatpush.msra.mxu2 %v698_v1  ;;  %v913_v28 = vor.u32 %v1078_v23, %v910_v24 }
  0x25   :  { %712 = vmatpush.msra.mxu2 %v697_v6 }
  0x26   :  { %1107 = vmatpush.bf16.msrb.mxu3 %v1064_v3  ;;  %v1077_v3 = vld [vmem:[%s1584_s0 + $0x54] sm:$0xf0] }
  0x27   :  { %v901_v10 = vor.u32 %v1077_v3, %v900_v2  ;;  %v940_v3 = vld [vmem:[%s1584_s0 + $0xa0] sm:$0xf] }
  0x2a   :  { %1108 = vmatpush.bf16.msrb.mxu3 %v1063_v5  ;;  %v966_v5 = vld [vmem:[%s1584_s0 + $0xd8] sm:$0xf0] }
  0x2e   :  { %1109 = vmatpush.bf16.msrb.mxu3 %v1062_v7  ;;  %v1076_v7 = vld [vmem:[%s1584_s0 + $0x54] sm:$0xf] }
  0x2f   :  { %v905_v12 = vor.u32 %v1076_v7, %v902_v8 }
  0x31   :  { %423 = vmatmul.bf16.gmra.mxu0 %v869_v31  ;;  %483 = vmatmul.bf16.gmra.mxu3 %v965_v32  ;;  %v916_v31 = vld [vmem:[%s1584_s0 + $0x70] sm:$0xf]  ;;  %v1081_v32 = vld [vmem:[%s1584_s0 + $0x74] sm:$0xf0] }
  0x32   :  { %1110 = vmatpush.bf16.msrb.mxu3 %v1061_v9  ;;  %512 = vmatmul.bf16.gmra.mxu1 %v873_v33  ;;  %v696_v9 = vld [vmem:[%s1585_s2 + $0x48] sm:$0xff]  ;;  %v1096_v33 = vld [vmem:[%s1584_s0 + $0xf4] sm:$0xf]  ;;  %v917_v37 = vor.u32 %v1081_v32, %v916_v31 }
  0x33   :  { %713 = vmatpush.msra.mxu2 %v696_v9  ;;  %v985_v38 = vor.u32 %v1096_v33, %v982_v34 }
  0x36   :  { %1111 = vmatpush.bf16.msrb.mxu3 %v1060_v11  ;;  %v969_v11 = vor.u32 %v1092_v4, %v966_v5  ;;  %v1087_v4 = vld [vmem:[%s1584_s0 + $0xa4] sm:$0xf0]  ;;  %v1086_v5 = vld [vmem:[%s1584_s0 + $0xa4] sm:$0xf] }
  0x37   :  { %v941_v8 = vor.u32 %v1087_v4, %v940_v3 }
  0x3a   :  { %1112 = vmatpush.bf16.msrb.mxu3 %v1059_v13  ;;  %v695_v13 = vld [vmem:[%s1585_s2 + $0x40] sm:$0xff] }
  0x3b   :  { %714 = vmatpush.msra.mxu2 %v695_v13 }
  0x3d   :  { %715 = vmatpush.msra.mxu2 %v694_v14 }
  0x3e   :  { %1113 = vmatpush.bf16.msrb.mxu3 %v1058_v19  ;;  %v690_v19 = vld [vmem:[%s1585_s2 + $0x18] sm:$0xff] }
  0x3f   :  { %716 = vmatpush.msra.mxu2 %v693_v15 }
  0x41   :  { %428 = vmatmul.bf16.gmra.mxu0 %v877_v40  ;;  %488 = vmatmul.bf16.gmra.mxu3 %v973_v41  ;;  %v924_v40 = vld [vmem:[%s1584_s0 + $0x80] sm:$0xf]  ;;  %v1083_v41 = vld [vmem:[%s1584_s0 + $0x84] sm:$0xf0] }
  0x42   :  { %517 = vmatmul.bf16.gmra.mxu1 %v881_v42  ;;  %1114 = vmatpush.msra.mxu3 %v702_v61  ;;  %v1082_v42 = vld [vmem:[%s1584_s0 + $0x84] sm:$0xf]  ;;  %v925_v44 = vor.u32 %v1083_v41, %v924_v40 }
  0x43   :  { %717 = vmatpush.msra.mxu2 %v692_v16  ;;  %v929_v46 = vor.u32 %v1082_v42, %v926_v43 }
  0x44   :  { %1115 = vmatpush.msra.mxu3 %v701_v62 }
  0x45   :  { %718 = vmatpush.msra.mxu2 %v691_v17 }
  0x46   :  { %1116 = vmatpush.msra.mxu3 %v700_v63 }
  0x47   :  { %719 = vmatpush.msra.mxu2 %v690_v19 }
  0x48   :  { %1117 = vmatpush.msra.mxu3 %v699_v0 }
  0x49   :  { %720 = vmatpush.msra.mxu2 %v689_v25 }
  0x4a   :  { %1118 = vmatpush.msra.mxu3 %v698_v1 }
  0x4b   :  { %721 = vmatpush.msra.mxu2 %v688_v29 }
  0x4c   :  { %1119 = vmatpush.msra.mxu3 %v697_v6  ;;  %v942_v6 = vld [vmem:[%s1584_s0 + $0xa8] sm:$0xf0] }
  0x4d   :  { %722 = vmatpush.msra.mxu2 %v687_v30 }
  0x4e   :  { %1120 = vmatpush.msra.mxu3 %v696_v9 }
  0x50   :  { %1121 = vmatpush.msra.mxu3 %v695_v13 }
  0x51   :  { %433 = vmatmul.bf16.gmra.mxu0 %v885_v49  ;;  %493 = vmatmul.bf16.gmra.mxu3 %v981_v50 }
  0x52   :  { %522 = vmatmul.bf16.gmra.mxu1 %v889_v51  ;;  %1122 = vmatpush.msra.mxu3 %v694_v14 }
  0x54   :  { %1123 = vmatpush.msra.mxu3 %v693_v15 }
  0x56   :  { %1124 = vmatpush.msra.mxu3 %v692_v16 }
  0x58   :  { %1125 = vmatpush.msra.mxu3 %v691_v17  ;;  %v948_v17 = vld [vmem:[%s1584_s0 + $0xb0] sm:$0xf] }
  0x59   :  { %v949_v22 = vor.u32 %v1089_v18, %v948_v17 }
  0x5a   :  { %1126 = vmatpush.msra.mxu3 %v690_v19  ;;  %v1088_v19 = vld [vmem:[%s1584_s0 + $0xb4] sm:$0xf] }
  0x5b   :  { %v953_v24 = vor.u32 %v1088_v19, %v950_v20 }
  0x5c   :  { %1127 = vmatpush.msra.mxu3 %v689_v25 }
  0x5e   :  { %1128 = vmatpush.msra.mxu3 %v688_v29 }
  0x60   :  { %1129 = vmatpush.msra.mxu3 %v687_v30 }
  0x61   :  { %438 = vmatmul.bf16.gmra.mxu0 %v893_v58  ;;  %567 = vmatmul.bf16.vlgmr.msrb.gmra.mxu3 %v961_v59  ;;  %v933_v58 = vor.u32 %v1085_v54, %v932_v53 }
  0x62   :  { %527 = vmatmul.bf16.gmra.mxu1 %v897_v60  ;;  %v937_v60 = vor.u32 %v1084_v55, %v934_v56 }
  0x71   :  { %443 = vmatmul.bf16.gmra.mxu0 %v901_v10  ;;  %572 = vmatmul.bf16.gmra.mxu3 %v969_v11  ;;  %v945_v10 = vor.u32 %v1086_v5, %v942_v6 }
  0x72   :  { %532 = vmatmul.bf16.gmra.mxu1 %v905_v12 }
  0x81   :  { %448 = vmatmul.bf16.gmra.mxu0 %v909_v26  ;;  %577 = vmatmul.bf16.gmra.mxu3 %v977_v27 }
  0x82   :  { %537 = vmatmul.bf16.gmra.mxu1 %v913_v28 }
  0x91   :  { %453 = vmatmul.bf16.gmra.mxu0 %v917_v37  ;;  %582 = vmatmul.bf16.gmra.mxu3 %v985_v38 }
  0x92   :  { %542 = vmatmul.bf16.gmra.mxu1 %v921_v39 }
  0x9e   :  { %v419_v45 = vpop.f32.mrf.mxu0 }
  0x9f   :  { %v508_v47 = vpop.f32.mrf.mxu1 }
  0xa0   :  { %v509_v48 = vadd.f32 %v508_v47, %v419_v45 }
  0xa1   :  { %458 = vmatmul.bf16.gmra.mxu0 %v925_v44 }
  0xa2   :  { %547 = vmatmul.bf16.gmra.mxu1 %v929_v46  ;;  %723 = vmatmul.f32.vlgmr.msra.gmra.mxu2 %v509_v48 }
  0xa4   :  { %v1408_v49 = vpop.f32.mrf.mxu3 }
  0xa6   :  { %v421_v50 = vpop.f32.mrf.mxu0 }
  0xa7   :  { %v510_v51 = vpop.f32.mrf.mxu1 }
  0xa8   :  { %v511_v52 = vadd.f32 %v510_v51, %v421_v50 }
  0xaa   :  { %726 = vmatmul.f32.gmra.mxu2 %v511_v52 }
  0xac   :  { %v1422_v57 = vpop.f32.mrf.mxu3 }
  0xae   :  { %v424_v59 = vpop.f32.mrf.mxu0 }
  0xaf   :  { %v513_v61 = vpop.f32.mrf.mxu1 }
  0xb0   :  { %v514_v62 = vadd.f32 %v513_v61, %v424_v59 }
  0xb1   :  { %463 = vmatmul.bf16.gmra.mxu0 %v933_v58 }
  0xb2   :  { %552 = vmatmul.bf16.gmra.mxu1 %v937_v60  ;;  %729 = vmatmul.f32.gmra.mxu2 %v514_v62 }
  0xb4   :  { %v484_v63 = vpop.f32.mrf.mxu3 }
  0xb6   :  { %v426_v0 = vpop.f32.mrf.mxu0 }
  0xb7   :  { %v515_v1 = vpop.f32.mrf.mxu1 }
  0xb8   :  { %v516_v2 = vadd.f32 %v515_v1, %v426_v0 }
  0xba   :  { %732 = vmatmul.f32.gmra.mxu2 %v516_v2 }
  0xbc   :  { %v486_v7 = vpop.f32.mrf.mxu3 }
  0xbe   :  { %v429_v9 = vpop.f32.mrf.mxu0 }
  0xbf   :  { %v518_v11 = vpop.f32.mrf.mxu1 }
  0xc0   :  { %v519_v12 = vadd.f32 %v518_v11, %v429_v9  ;;  %v1453_v11 = vld [vmem:[%s1586_s3] ss:$0 sm:$0xff] }
  0xc1   :  { %468 = vmatmul.bf16.gmra.mxu0 %v941_v8 }
  0xc2   :  { %557 = vmatmul.bf16.gmra.mxu1 %v945_v10  ;;  %735 = vmatmul.f32.gmra.mxu2 %v519_v12 }
  0xc4   :  { %v489_v13 = vpop.f32.mrf.mxu3 }
  0xc6   :  { %v431_v14 = vpop.f32.mrf.mxu0 }
  0xc7   :  { %v520_v15 = vpop.f32.mrf.mxu1 }
  0xc8   :  { %v521_v16 = vadd.f32 %v520_v15, %v431_v14 }
  0xca   :  { %738 = vmatmul.f32.gmra.mxu2 %v521_v16 }
  0xcc   :  { %v491_v21 = vpop.f32.mrf.mxu3 }
  0xce   :  { %v434_v23 = vpop.f32.mrf.mxu0 }
  0xcf   :  { %v523_v25 = vpop.f32.mrf.mxu1 }
  0xd0   :  { %v524_v26 = vadd.f32 %v523_v25, %v434_v23 }
  0xd1   :  { %473 = vmatmul.bf16.gmra.mxu0 %v949_v22 }
  0xd2   :  { %562 = vmatmul.bf16.gmra.mxu1 %v953_v24  ;;  %741 = vmatmul.f32.gmra.mxu2 %v524_v26 }
  0xd4   :  { %v494_v27 = vpop.f32.mrf.mxu3 }
  0xd6   :  { %v436_v28 = vpop.f32.mrf.mxu0 }
  0xd7   :  { %v525_v29 = vpop.f32.mrf.mxu1 }
  0xd8   :  { %v526_v30 = vadd.f32 %v525_v29, %v436_v28 }
  0xda   :  { %744 = vmatmul.f32.gmra.mxu2 %v526_v30 }
  0xdc   :  { %v496_v31 = vpop.f32.mrf.mxu3 }
  0xde   :  { %v439_v32 = vpop.f32.mrf.mxu0 }
  0xdf   :  { %v528_v33 = vpop.f32.mrf.mxu1 }
  0xe0   :  { %v529_v34 = vadd.f32 %v528_v33, %v439_v32 }
  0xe2   :  { %747 = vmatmul.f32.gmra.mxu2 %v529_v34 }
  0xe4   :  { %v568_v35 = vpop.f32.mrf.mxu3 }
  0xe5   :  { %v569_v36 = vadd.f32 %v568_v35, %v1408_v49 }
  0xe6   :  { %v441_v37 = vpop.f32.mrf.mxu0 }
  0xe7   :  { %v530_v38 = vpop.f32.mrf.mxu1  ;;  %795 = vmatmul.f32.vlgmr.msra.gmra.mxu3 %v569_v36 }
  0xe8   :  { %v531_v39 = vadd.f32 %v530_v38, %v441_v37 }
  0xea   :  { %750 = vmatmul.f32.gmra.mxu2 %v531_v39 }
  0xec   :  { %v570_v40 = vpop.f32.mrf.mxu3 }
  0xed   :  { %v571_v41 = vadd.f32 %v570_v40, %v1422_v57 }
  0xee   :  { %v444_v42 = vpop.f32.mrf.mxu0 }
  0xef   :  { %v533_v43 = vpop.f32.mrf.mxu1  ;;  %798 = vmatmul.f32.gmra.mxu3 %v571_v41 }
  0xf0   :  { %v534_v44 = vadd.f32 %v533_v43, %v444_v42 }
  0xf2   :  { %753 = vmatmul.f32.gmra.mxu2 %v534_v44 }
  0xf4   :  { %v573_v45 = vpop.f32.mrf.mxu3 }
  0xf5   :  { %v574_v46 = vadd.f32 %v573_v45, %v484_v63 }
  0xf6   :  { %v446_v47 = vpop.f32.mrf.mxu0 }
  0xf7   :  { %v535_v48 = vpop.f32.mrf.mxu1  ;;  %801 = vmatmul.f32.gmra.mxu3 %v574_v46 }
  0xf8   :  { %v536_v50 = vadd.f32 %v535_v48, %v446_v47 }
  0xfa   :  { %756 = vmatmul.f32.gmra.mxu2 %v536_v50 }
  0xfc   :  { %v575_v49 = vpop.f32.mrf.mxu3 }
  0xfd   :  { %v576_v51 = vadd.f32 %v575_v49, %v486_v7 }
  0xfe   :  { %v449_v52 = vpop.f32.mrf.mxu0 }
  0xff   :  { %v538_v53 = vpop.f32.mrf.mxu1  ;;  %804 = vmatmul.f32.gmra.mxu3 %v576_v51 }
 0x100   :  { %v539_v54 = vadd.f32 %v538_v53, %v449_v52 }
 0x102   :  { %759 = vmatmul.f32.gmra.mxu2 %v539_v54 }
 0x104   :  { %v578_v55 = vpop.f32.mrf.mxu3 }
 0x105   :  { %v579_v56 = vadd.f32 %v578_v55, %v489_v13 }
 0x106   :  { %v451_v57 = vpop.f32.mrf.mxu0 }
 0x107   :  { %v540_v58 = vpop.f32.mrf.mxu1  ;;  %807 = vmatmul.f32.gmra.mxu3 %v579_v56 }
 0x108   :  { %v541_v59 = vadd.f32 %v540_v58, %v451_v57 }
 0x10a   :  { %762 = vmatmul.f32.gmra.mxu2 %v541_v59 }
 0x10c   :  { %v580_v60 = vpop.f32.mrf.mxu3 }
 0x10d   :  { %v581_v61 = vadd.f32 %v580_v60, %v491_v21 }
 0x10e   :  { %v454_v62 = vpop.f32.mrf.mxu0 }
 0x10f   :  { %v543_v63 = vpop.f32.mrf.mxu1  ;;  %810 = vmatmul.f32.gmra.mxu3 %v581_v61 }
 0x110   :  { %v544_v0 = vadd.f32 %v543_v63, %v454_v62 }
 0x112   :  { %765 = vmatmul.f32.gmra.mxu2 %v544_v0 }
 0x114   :  { %v583_v1 = vpop.f32.mrf.mxu3 }
 0x115   :  { %v584_v2 = vadd.f32 %v583_v1, %v494_v27 }
 0x116   :  { %v456_v3 = vpop.f32.mrf.mxu0 }
 0x117   :  { %v545_v4 = vpop.f32.mrf.mxu1  ;;  %813 = vmatmul.f32.gmra.mxu3 %v584_v2 }
 0x118   :  { %v546_v5 = vadd.f32 %v545_v4, %v456_v3 }
 0x11a   :  { %768 = vmatmul.f32.gmra.mxu2 %v546_v5 }
 0x11c   :  { %v585_v6 = vpop.f32.mrf.mxu3 }
 0x11d   :  { %v586_v7 = vadd.f32 %v585_v6, %v496_v31 }
 0x11e   :  { %v459_v8 = vpop.f32.mrf.mxu0 }
 0x11f   :  { %v548_v9 = vpop.f32.mrf.mxu1  ;;  %816 = vmatmul.f32.gmra.mxu3 %v586_v7 }
 0x120   :  { %v549_v10 = vadd.f32 %v548_v9, %v459_v8 }
 0x122   :  { %771 = vmatmul.f32.gmra.mxu2 %v549_v10 }
 0x125   :  { %v724_v12 = vpop.f32.mrf.mxu2 }
 0x126   :  { %v725_v13 = vadd.f32 %v1453_v11, %v724_v12  ;;  %v461_v14 = vpop.f32.mrf.mxu0 }
 0x127   :  { %v550_v15 = vpop.f32.mrf.mxu1 }
 0x128   :  { %820 = vst [vmem:[%s1587_s4] sm:$0xff] %v725_v13  ;;  %v551_v16 = vadd.f32 %v550_v15, %v461_v14 }
 0x12a   :  { %774 = vmatmul.f32.gmra.mxu2 %v551_v16 }
 0x12d   :  { %v727_v17 = vpop.f32.mrf.mxu2 }
 0x12e   :  { %v728_v18 = vadd.f32 %v1453_v11, %v727_v17  ;;  %v464_v19 = vpop.f32.mrf.mxu0 }
 0x12f   :  { %v553_v20 = vpop.f32.mrf.mxu1 }
 0x130   :  { %821 = vst [vmem:[%s1587_s4 + $0x8] sm:$0xff] %v728_v18  ;;  %v554_v21 = vadd.f32 %v553_v20, %v464_v19 }
 0x132   :  { %777 = vmatmul.f32.gmra.mxu2 %v554_v21 }
 0x135   :  { %v730_v22 = vpop.f32.mrf.mxu2 }
 0x136   :  { %v731_v23 = vadd.f32 %v1453_v11, %v730_v22  ;;  %v466_v24 = vpop.f32.mrf.mxu0 }
 0x137   :  { %v555_v25 = vpop.f32.mrf.mxu1 }
 0x138   :  { %822 = vst [vmem:[%s1587_s4 + $0x10] sm:$0xff] %v731_v23  ;;  %v556_v26 = vadd.f32 %v555_v25, %v466_v24 }
 0x13a   :  { %780 = vmatmul.f32.gmra.mxu2 %v556_v26 }
 0x13d   :  { %v733_v27 = vpop.f32.mrf.mxu2 }
 0x13e   :  { %v734_v28 = vadd.f32 %v1453_v11, %v733_v27  ;;  %v469_v29 = vpop.f32.mrf.mxu0 }
 0x13f   :  { %v558_v30 = vpop.f32.mrf.mxu1 }
 0x140   :  { %823 = vst [vmem:[%s1587_s4 + $0x18] sm:$0xff] %v734_v28  ;;  %v559_v31 = vadd.f32 %v558_v30, %v469_v29 }
 0x142   :  { %783 = vmatmul.f32.gmra.mxu2 %v559_v31 }
 0x145   :  { %v736_v32 = vpop.f32.mrf.mxu2 }
 0x146   :  { %v737_v33 = vadd.f32 %v1453_v11, %v736_v32  ;;  %v471_v34 = vpop.f32.mrf.mxu0 }
 0x147   :  { %v560_v35 = vpop.f32.mrf.mxu1 }
 0x148   :  { %824 = vst [vmem:[%s1587_s4 + $0x20] sm:$0xff] %v737_v33  ;;  %v561_v36 = vadd.f32 %v560_v35, %v471_v34 }
 0x14a   :  { %786 = vmatmul.f32.gmra.mxu2 %v561_v36 }
 0x14d   :  { %v739_v37 = vpop.f32.mrf.mxu2 }
 0x14e   :  { %v740_v38 = vadd.f32 %v1453_v11, %v739_v37  ;;  %v474_v39 = vpop.f32.mrf.mxu0 }
 0x14f   :  { %v563_v40 = vpop.f32.mrf.mxu1 }
 0x150   :  { %825 = vst [vmem:[%s1587_s4 + $0x28] sm:$0xff] %v740_v38  ;;  %v564_v41 = vadd.f32 %v563_v40, %v474_v39 }
 0x152   :  { %789 = vmatmul.f32.gmra.mxu2 %v564_v41 }
 0x155   :  { %v742_v42 = vpop.f32.mrf.mxu2 }
 0x156   :  { %v743_v43 = vadd.f32 %v1453_v11, %v742_v42  ;;  %v476_v44 = vpop.f32.mrf.mxu0 }
 0x157   :  { %v565_v45 = vpop.f32.mrf.mxu1 }
 0x158   :  { %826 = vst [vmem:[%s1587_s4 + $0x30] sm:$0xff] %v743_v43  ;;  %v566_v46 = vadd.f32 %v565_v45, %v476_v44 }
 0x15a   :  { %792 = vmatmul.f32.gmra.mxu2 %v566_v46 }
 0x15d   :  { %v745_v47 = vpop.f32.mrf.mxu2 }
 0x15e   :  { %v746_v48 = vadd.f32 %v1453_v11, %v745_v47 }
 0x160   :  { %827 = vst [vmem:[%s1587_s4 + $0x38] sm:$0xff] %v746_v48 }
 0x165   :  { %v748_v50 = vpop.f32.mrf.mxu2 }
 0x166   :  { %v749_v49 = vadd.f32 %v1453_v11, %v748_v50 }
 0x168   :  { %828 = vst [vmem:[%s1587_s4 + $0x40] sm:$0xff] %v749_v49 }
 0x16a   :  { %v796_v51 = vpop.f32.mrf.mxu3 }
 0x16b   :  { %v797_v52 = vadd.f32 %v1453_v11, %v796_v51 }
 0x16d   :  { %844 = vst [vmem:[%s1587_s4 + $0xc0] sm:$0xff] %v797_v52  ;;  %v751_v53 = vpop.f32.mrf.mxu2 }
 0x16e   :  { %v752_v54 = vadd.f32 %v1453_v11, %v751_v53 }
 0x170   :  { %829 = vst [vmem:[%s1587_s4 + $0x48] sm:$0xff] %v752_v54 }
 0x172   :  { %v799_v55 = vpop.f32.mrf.mxu3 }
 0x173   :  { %v800_v56 = vadd.f32 %v1453_v11, %v799_v55 }
 0x175   :  { %845 = vst [vmem:[%s1587_s4 + $0xc8] sm:$0xff] %v800_v56  ;;  %v754_v57 = vpop.f32.mrf.mxu2 }
 0x176   :  { %v755_v58 = vadd.f32 %v1453_v11, %v754_v57 }
 0x178   :  { %830 = vst [vmem:[%s1587_s4 + $0x50] sm:$0xff] %v755_v58 }
 0x17a   :  { %v802_v59 = vpop.f32.mrf.mxu3 }
 0x17b   :  { %v803_v60 = vadd.f32 %v1453_v11, %v802_v59 }
 0x17d   :  { %846 = vst [vmem:[%s1587_s4 + $0xd0] sm:$0xff] %v803_v60  ;;  %v757_v61 = vpop.f32.mrf.mxu2 }
 0x17e   :  { %v758_v62 = vadd.f32 %v1453_v11, %v757_v61 }
 0x180   :  { %831 = vst [vmem:[%s1587_s4 + $0x58] sm:$0xff] %v758_v62 }
 0x182   :  { %v805_v63 = vpop.f32.mrf.mxu3 }
 0x183   :  { %v806_v0 = vadd.f32 %v1453_v11, %v805_v63 }
 0x185   :  { %847 = vst [vmem:[%s1587_s4 + $0xd8] sm:$0xff] %v806_v0  ;;  %v760_v1 = vpop.f32.mrf.mxu2 }
 0x186   :  { %v761_v2 = vadd.f32 %v1453_v11, %v760_v1 }
 0x188   :  { %832 = vst [vmem:[%s1587_s4 + $0x60] sm:$0xff] %v761_v2 }
 0x18a   :  { %v808_v3 = vpop.f32.mrf.mxu3 }
 0x18b   :  { %v809_v4 = vadd.f32 %v1453_v11, %v808_v3 }
 0x18d   :  { %848 = vst [vmem:[%s1587_s4 + $0xe0] sm:$0xff] %v809_v4  ;;  %v763_v5 = vpop.f32.mrf.mxu2 }
 0x18e   :  { %v764_v6 = vadd.f32 %v1453_v11, %v763_v5 }
 0x190   :  { %833 = vst [vmem:[%s1587_s4 + $0x68] sm:$0xff] %v764_v6 }
 0x192   :  { %v811_v7 = vpop.f32.mrf.mxu3 }
 0x193   :  { %v812_v8 = vadd.f32 %v1453_v11, %v811_v7 }
 0x195   :  { %849 = vst [vmem:[%s1587_s4 + $0xe8] sm:$0xff] %v812_v8  ;;  %v766_v9 = vpop.f32.mrf.mxu2 }
 0x196   :  { %v767_v10 = vadd.f32 %v1453_v11, %v766_v9 }
 0x198   :  { %834 = vst [vmem:[%s1587_s4 + $0x70] sm:$0xff] %v767_v10 }
 0x19a   :  { %v814_v12 = vpop.f32.mrf.mxu3 }
 0x19b   :  { %v815_v13 = vadd.f32 %v1453_v11, %v814_v12 }
 0x19d   :  { %850 = vst [vmem:[%s1587_s4 + $0xf0] sm:$0xff] %v815_v13  ;;  %v769_v14 = vpop.f32.mrf.mxu2 }
 0x19e   :  { %v770_v15 = vadd.f32 %v1453_v11, %v769_v14 }
 0x1a0   :  { %835 = vst [vmem:[%s1587_s4 + $0x78] sm:$0xff] %v770_v15 }
 0x1a2   :  { %v817_v16 = vpop.f32.mrf.mxu3 }
 0x1a3   :  { %v818_v17 = vadd.f32 %v1453_v11, %v817_v16 }
 0x1a5   :  { %851 = vst [vmem:[%s1587_s4 + $0xf8] sm:$0xff] %v818_v17  ;;  %v772_v18 = vpop.f32.mrf.mxu2 }
 0x1a6   :  { %v773_v19 = vadd.f32 %v1453_v11, %v772_v18 }
 0x1a8   :  { %836 = vst [vmem:[%s1587_s4 + $0x80] sm:$0xff] %v773_v19 }
 0x1ad   :  { %v775_v20 = vpop.f32.mrf.mxu2 }
 0x1ae   :  { %v776_v21 = vadd.f32 %v1453_v11, %v775_v20 }
 0x1b0   :  { %837 = vst [vmem:[%s1587_s4 + $0x88] sm:$0xff] %v776_v21 }
 0x1b5   :  { %v778_v22 = vpop.f32.mrf.mxu2 }
 0x1b6   :  { %v779_v23 = vadd.f32 %v1453_v11, %v778_v22 }
 0x1b8   :  { %838 = vst [vmem:[%s1587_s4 + $0x90] sm:$0xff] %v779_v23 }
 0x1bd   :  { %v781_v24 = vpop.f32.mrf.mxu2 }
 0x1be   :  { %v782_v25 = vadd.f32 %v1453_v11, %v781_v24 }
 0x1c0   :  { %839 = vst [vmem:[%s1587_s4 + $0x98] sm:$0xff] %v782_v25 }
 0x1c5   :  { %v784_v26 = vpop.f32.mrf.mxu2 }
 0x1c6   :  { %v785_v27 = vadd.f32 %v1453_v11, %v784_v26 }
 0x1c8   :  { %840 = vst [vmem:[%s1587_s4 + $0xa0] sm:$0xff] %v785_v27 }
 0x1cd   :  { %v787_v28 = vpop.f32.mrf.mxu2 }
 0x1ce   :  { %v788_v29 = vadd.f32 %v1453_v11, %v787_v28 }
 0x1d0   :  { %841 = vst [vmem:[%s1587_s4 + $0xa8] sm:$0xff] %v788_v29 }
 0x1d5   :  { %v790_v30 = vpop.f32.mrf.mxu2 }
 0x1d6   :  { %v791_v31 = vadd.f32 %v1453_v11, %v790_v30 }
 0x1d8   :  { %842 = vst [vmem:[%s1587_s4 + $0xb0] sm:$0xff] %v791_v31 }
 0x1dd   :  { %v793_v32 = vpop.f32.mrf.mxu2 }
 0x1de   :  { %v794_v33 = vadd.f32 %v1453_v11, %v793_v32 }
 0x1e0   :  { %843 = vst [vmem:[%s1587_s4 + $0xb8] sm:$0xff] %v794_v33 }

// kernel: gcn_forward.2
= control target key start
LH: loop header
LB: loop body
LE: loop exit
PB: predicated region body
PF: predicated region fallthrough
CT: control target
= control target key end

     0   :  { %s1694_s1 = inlined_call_operand.vmem [shape: bf16[256,128], index: 1, kind: input, shape index: {}]   ;;  %s1695_s0 = inlined_call_operand.vmem [shape: bf16[256,256], index: 0, kind: input, shape index: {}]   ;;  %s1696_s2 = inlined_call_operand.vmem [shape: f32[128,128], index: 2, kind: input, shape index: {}]   ;;  %s1697_s3 = inlined_call_operand.vmem [shape: f32[1,128], index: 3, kind: input, shape index: {}]   ;;  %s1698_s4 = inlined_call_operand.vmem [shape: bf16[256,128], index: 4, kind: output, shape index: {}]  }
   0x1   :  { %v1121_v0 = vld [vmem:[%s1694_s1 + $0x38] sm:$0xff]  ;;  %v1120_v2 = vld [vmem:[%s1694_s1 + $0x30] sm:$0xff]  ;;  %v1119_v4 = vld [vmem:[%s1694_s1 + $0x28] sm:$0xff] }
   0x2   :  { %v1129_v1 = vld [vmem:[%s1694_s1 + $0x78] sm:$0xff]  ;;  %410 = vmatpush.bf16.msra.mxu0 %v1121_v0  ;;  %1257 = vmatpush.bf16.msra.mxu3 %v1121_v0  ;;  %v1128_v3 = vld [vmem:[%s1694_s1 + $0x70] sm:$0xff]  ;;  %v1127_v5 = vld [vmem:[%s1694_s1 + $0x68] sm:$0xff] }
   0x3   :  { %499 = vmatpush.bf16.msra.mxu1 %v1129_v1  ;;  %v1118_v6 = vld [vmem:[%s1694_s1 + $0x20] sm:$0xff]  ;;  %v1117_v8 = vld [vmem:[%s1694_s1 + $0x18] sm:$0xff]  ;;  %v1116_v10 = vld [vmem:[%s1694_s1 + $0x10] sm:$0xff] }
   0x4   :  { %v1126_v7 = vld [vmem:[%s1694_s1 + $0x60] sm:$0xff]  ;;  %v1125_v9 = vld [vmem:[%s1694_s1 + $0x58] sm:$0xff]  ;;  %v1124_v11 = vld [vmem:[%s1694_s1 + $0x50] sm:$0xff] }
   0x5   :  { %v1115_v12 = vld [vmem:[%s1694_s1 + $0x8] sm:$0xff]  ;;  %v1114_v14 = vld [vmem:[%s1694_s1] sm:$0xff]  ;;  %v932_v25 = vld [vmem:[%s1695_s0 + $0x10] sm:$0xf] }
   0x6   :  { %411 = vmatpush.bf16.msra.mxu0 %v1120_v2  ;;  %1258 = vmatpush.bf16.msra.mxu3 %v1120_v2  ;;  %v1123_v13 = vld [vmem:[%s1694_s1 + $0x48] sm:$0xff]  ;;  %v924_v15 = vld [vmem:[%s1695_s0] sm:$0xf]  ;;  %v1130_v20 = vld [vmem:[%s1695_s0 + $0x4] sm:$0xf] }
   0x7   :  { %500 = vmatpush.bf16.msra.mxu1 %v1128_v3  ;;  %v1131_v16 = vld [vmem:[%s1695_s0 + $0x4] sm:$0xf0]  ;;  %v1020_v17 = vld [vmem:[%s1695_s0 + $0xc0] sm:$0xf]  ;;  %v926_v21 = vld [vmem:[%s1695_s0 + $0x8] sm:$0xf0] }
   0x8   :  { %v1155_v18 = vld [vmem:[%s1695_s0 + $0xc4] sm:$0xf0]  ;;  %v1122_v19 = vld [vmem:[%s1694_s1 + $0x40] sm:$0xff]  ;;  %v925_v22 = vor.u32 %v1131_v16, %v924_v15  ;;  %v929_v24 = vor.u32 %v1130_v20, %v926_v21  ;;  %v1133_v26 = vld [vmem:[%s1695_s0 + $0x14] sm:$0xf0] }
   0x9   :  { %v1021_v23 = vor.u32 %v1155_v18, %v1020_v17  ;;  %v1028_v27 = vld [vmem:[%s1695_s0 + $0xd0] sm:$0xf]  ;;  %v1157_v28 = vld [vmem:[%s1695_s0 + $0xd4] sm:$0xf0]  ;;  %v1132_v29 = vld [vmem:[%s1695_s0 + $0x14] sm:$0xf]  ;;  %v933_v31 = vor.u32 %v1133_v26, %v932_v25 }
   0xa   :  { %412 = vmatpush.bf16.msra.mxu0 %v1119_v4  ;;  %1259 = vmatpush.bf16.msra.mxu3 %v1119_v4  ;;  %v934_v30 = vld [vmem:[%s1695_s0 + $0x18] sm:$0xf0]  ;;  %v1029_v32 = vor.u32 %v1157_v28, %v1028_v27  ;;  %v940_v34 = vld [vmem:[%s1695_s0 + $0x20] sm:$0xf]  ;;  %v1135_v35 = vld [vmem:[%s1695_s0 + $0x24] sm:$0xf0] }
   0xb   :  { %501 = vmatpush.bf16.msra.mxu1 %v1127_v5  ;;  %v937_v33 = vor.u32 %v1132_v29, %v934_v30  ;;  %v1036_v36 = vld [vmem:[%s1695_s0 + $0xe0] sm:$0xf]  ;;  %v1159_v37 = vld [vmem:[%s1695_s0 + $0xe4] sm:$0xf0]  ;;  %v1134_v38 = vld [vmem:[%s1695_s0 + $0x24] sm:$0xf]  ;;  %v941_v40 = vor.u32 %v1135_v35, %v940_v34 }
   0xc   :  { %v942_v39 = vld [vmem:[%s1695_s0 + $0x28] sm:$0xf0]  ;;  %v1037_v41 = vor.u32 %v1159_v37, %v1036_v36  ;;  %v948_v43 = vld [vmem:[%s1695_s0 + $0x30] sm:$0xf]  ;;  %v1137_v44 = vld [vmem:[%s1695_s0 + $0x34] sm:$0xf0] }
   0xd   :  { %v945_v42 = vor.u32 %v1134_v38, %v942_v39  ;;  %v1044_v45 = vld [vmem:[%s1695_s0 + $0xf0] sm:$0xf]  ;;  %v1161_v46 = vld [vmem:[%s1695_s0 + $0xf4] sm:$0xf0]  ;;  %v1136_v47 = vld [vmem:[%s1695_s0 + $0x34] sm:$0xf]  ;;  %v949_v49 = vor.u32 %v1137_v44, %v948_v43 }
   0xe   :  { %413 = vmatpush.bf16.msra.mxu0 %v1118_v6  ;;  %1260 = vmatpush.bf16.msra.mxu3 %v1118_v6  ;;  %v950_v48 = vld [vmem:[%s1695_s0 + $0x38] sm:$0xf0]  ;;  %v1045_v50 = vor.u32 %v1161_v46, %v1044_v45  ;;  %v956_v52 = vld [vmem:[%s1695_s0 + $0x40] sm:$0xf]  ;;  %v1139_v53 = vld [vmem:[%s1695_s0 + $0x44] sm:$0xf0] }
   0xf   :  { %502 = vmatpush.bf16.msra.mxu1 %v1126_v7  ;;  %v953_v51 = vor.u32 %v1136_v47, %v950_v48  ;;  %v1154_v54 = vld [vmem:[%s1695_s0 + $0xc4] sm:$0xf]  ;;  %v1022_v55 = vld [vmem:[%s1695_s0 + $0xc8] sm:$0xf0]  ;;  %v957_v58 = vor.u32 %v1139_v53, %v956_v52  ;;  %v702_v61 = vld [vmem:[%s1696_s2 + $0x78] sm:$0xff] }
  0x10   :  { %v1138_v56 = vld [vmem:[%s1695_s0 + $0x44] sm:$0xf]  ;;  %v958_v57 = vld [vmem:[%s1695_s0 + $0x48] sm:$0xf0]  ;;  %v1025_v59 = vor.u32 %v1154_v54, %v1022_v55  ;;  %v701_v62 = vld [vmem:[%s1696_s2 + $0x70] sm:$0xff]  ;;  %707 = vmatpush.msra.mxu2 %v702_v61 }
  0x11   :  { %v961_v60 = vor.u32 %v1138_v56, %v958_v57  ;;  %v700_v63 = vld [vmem:[%s1696_s2 + $0x68] sm:$0xff]  ;;  %v699_v0 = vld [vmem:[%s1696_s2 + $0x60] sm:$0xff]  ;;  %v964_v2 = vld [vmem:[%s1695_s0 + $0x50] sm:$0xf] }
  0x12   :  { %414 = vmatpush.bf16.msra.mxu0 %v1117_v8  ;;  %1261 = vmatpush.bf16.msra.mxu3 %v1117_v8  ;;  %v1156_v4 = vld [vmem:[%s1695_s0 + $0xd4] sm:$0xf]  ;;  %v966_v8 = vld [vmem:[%s1695_s0 + $0x58] sm:$0xf0]  ;;  %v692_v16 = vld [vmem:[%s1696_s2 + $0x28] sm:$0xff] }
  0x13   :  { %503 = vmatpush.bf16.msra.mxu1 %v1125_v9  ;;  %708 = vmatpush.msra.mxu2 %v701_v62  ;;  %v697_v6 = vld [vmem:[%s1696_s2 + $0x50] sm:$0xff]  ;;  %v691_v17 = vld [vmem:[%s1696_s2 + $0x20] sm:$0xff]  ;;  %v1143_v20 = vld [vmem:[%s1695_s0 + $0x64] sm:$0xf0] }
  0x14   :  { %v693_v15 = vld [vmem:[%s1696_s2 + $0x30] sm:$0xff]  ;;  %v972_v18 = vld [vmem:[%s1695_s0 + $0x60] sm:$0xf]  ;;  %v1158_v21 = vld [vmem:[%s1695_s0 + $0xe4] sm:$0xf] }
  0x15   :  { %709 = vmatpush.msra.mxu2 %v700_v63  ;;  %v689_v25 = vld [vmem:[%s1696_s2 + $0x10] sm:$0xff]  ;;  %v973_v26 = vor.u32 %v1143_v20, %v972_v18  ;;  %v688_v29 = vld [vmem:[%s1696_s2 + $0x8] sm:$0xff]  ;;  %v687_v30 = vld [vmem:[%s1696_s2] sm:$0xff] }
  0x16   :  { %415 = vmatpush.bf16.msra.mxu0 %v1116_v10  ;;  %1262 = vmatpush.bf16.msra.mxu3 %v1116_v10  ;;  %v1046_v34 = vld [vmem:[%s1695_s0 + $0xf8] sm:$0xf0]  ;;  %v1144_v35 = vld [vmem:[%s1695_s0 + $0x74] sm:$0xf]  ;;  %v990_v43 = vld [vmem:[%s1695_s0 + $0x88] sm:$0xf0] }
  0x17   :  { %504 = vmatpush.bf16.msra.mxu1 %v1124_v11  ;;  %710 = vmatpush.msra.mxu2 %v699_v0  ;;  %v982_v36 = vld [vmem:[%s1695_s0 + $0x78] sm:$0xf0]  ;;  %v996_v53 = vld [vmem:[%s1695_s0 + $0x90] sm:$0xf]  ;;  %v1149_v54 = vld [vmem:[%s1695_s0 + $0x94] sm:$0xf0] }
  0x18   :  { %v985_v39 = vor.u32 %v1144_v35, %v982_v36  ;;  %v1148_v55 = vld [vmem:[%s1695_s0 + $0x94] sm:$0xf]  ;;  %v998_v56 = vld [vmem:[%s1695_s0 + $0x98] sm:$0xf0]  ;;  %v1153_v18 = vld [vmem:[%s1695_s0 + $0xb4] sm:$0xf0] }
  0x19   :  { %v1014_v20 = vld [vmem:[%s1695_s0 + $0xb8] sm:$0xf0] }
  0x1a   :  { %416 = vmatpush.bf16.msra.mxu0 %v1115_v12  ;;  %1263 = vmatpush.bf16.msra.mxu3 %v1115_v12 }
  0x1b   :  { %505 = vmatpush.bf16.msra.mxu1 %v1123_v13 }
  0x1e   :  { %417 = vmatpush.bf16.msra.mxu0 %v1114_v14  ;;  %1264 = vmatpush.bf16.msra.mxu3 %v1114_v14  ;;  %v694_v14 = vld [vmem:[%s1696_s2 + $0x38] sm:$0xff] }
  0x1f   :  { %506 = vmatpush.bf16.msra.mxu1 %v1122_v19 }
  0x21   :  { %418 = vmatmul.bf16.vlgmr.msra.gmra.mxu0 %v925_v22  ;;  %478 = vmatmul.bf16.vlgmr.msra.gmra.mxu3 %v1021_v23  ;;  %v1038_v22 = vld [vmem:[%s1695_s0 + $0xe8] sm:$0xf0]  ;;  %v1142_v23 = vld [vmem:[%s1695_s0 + $0x64] sm:$0xf] }
  0x22   :  { %1265 = vmatpush.bf16.msrb.mxu3 %v1129_v1  ;;  %507 = vmatmul.bf16.vlgmr.msra.gmra.mxu1 %v929_v24  ;;  %v698_v1 = vld [vmem:[%s1696_s2 + $0x58] sm:$0xff]  ;;  %v974_v24 = vld [vmem:[%s1695_s0 + $0x68] sm:$0xf0]  ;;  %v1041_v27 = vor.u32 %v1158_v21, %v1038_v22 }
  0x23   :  { %711 = vmatpush.msra.mxu2 %v698_v1  ;;  %v977_v28 = vor.u32 %v1142_v23, %v974_v24 }
  0x25   :  { %712 = vmatpush.msra.mxu2 %v697_v6 }
  0x26   :  { %1266 = vmatpush.bf16.msrb.mxu3 %v1128_v3  ;;  %v1141_v3 = vld [vmem:[%s1695_s0 + $0x54] sm:$0xf0] }
  0x27   :  { %v965_v10 = vor.u32 %v1141_v3, %v964_v2  ;;  %v1004_v3 = vld [vmem:[%s1695_s0 + $0xa0] sm:$0xf] }
  0x2a   :  { %1267 = vmatpush.bf16.msrb.mxu3 %v1127_v5  ;;  %v1030_v5 = vld [vmem:[%s1695_s0 + $0xd8] sm:$0xf0] }
  0x2e   :  { %1268 = vmatpush.bf16.msrb.mxu3 %v1126_v7  ;;  %v1140_v7 = vld [vmem:[%s1695_s0 + $0x54] sm:$0xf] }
  0x2f   :  { %v969_v12 = vor.u32 %v1140_v7, %v966_v8 }
  0x31   :  { %423 = vmatmul.bf16.gmra.mxu0 %v933_v31  ;;  %483 = vmatmul.bf16.gmra.mxu3 %v1029_v32  ;;  %v980_v31 = vld [vmem:[%s1695_s0 + $0x70] sm:$0xf]  ;;  %v1145_v32 = vld [vmem:[%s1695_s0 + $0x74] sm:$0xf0] }
  0x32   :  { %1269 = vmatpush.bf16.msrb.mxu3 %v1125_v9  ;;  %512 = vmatmul.bf16.gmra.mxu1 %v937_v33  ;;  %v696_v9 = vld [vmem:[%s1696_s2 + $0x48] sm:$0xff]  ;;  %v1160_v33 = vld [vmem:[%s1695_s0 + $0xf4] sm:$0xf]  ;;  %v981_v37 = vor.u32 %v1145_v32, %v980_v31 }
  0x33   :  { %713 = vmatpush.msra.mxu2 %v696_v9  ;;  %v1049_v38 = vor.u32 %v1160_v33, %v1046_v34 }
  0x36   :  { %1270 = vmatpush.bf16.msrb.mxu3 %v1124_v11  ;;  %v1033_v11 = vor.u32 %v1156_v4, %v1030_v5  ;;  %v1151_v4 = vld [vmem:[%s1695_s0 + $0xa4] sm:$0xf0]  ;;  %v1150_v5 = vld [vmem:[%s1695_s0 + $0xa4] sm:$0xf] }
  0x37   :  { %v1005_v8 = vor.u32 %v1151_v4, %v1004_v3 }
  0x3a   :  { %1271 = vmatpush.bf16.msrb.mxu3 %v1123_v13  ;;  %v695_v13 = vld [vmem:[%s1696_s2 + $0x40] sm:$0xff] }
  0x3b   :  { %714 = vmatpush.msra.mxu2 %v695_v13 }
  0x3d   :  { %715 = vmatpush.msra.mxu2 %v694_v14 }
  0x3e   :  { %1272 = vmatpush.bf16.msrb.mxu3 %v1122_v19  ;;  %v690_v19 = vld [vmem:[%s1696_s2 + $0x18] sm:$0xff] }
  0x3f   :  { %716 = vmatpush.msra.mxu2 %v693_v15 }
  0x41   :  { %428 = vmatmul.bf16.gmra.mxu0 %v941_v40  ;;  %488 = vmatmul.bf16.gmra.mxu3 %v1037_v41  ;;  %v988_v40 = vld [vmem:[%s1695_s0 + $0x80] sm:$0xf]  ;;  %v1147_v41 = vld [vmem:[%s1695_s0 + $0x84] sm:$0xf0] }
  0x42   :  { %517 = vmatmul.bf16.gmra.mxu1 %v945_v42  ;;  %1273 = vmatpush.msra.mxu3 %v702_v61  ;;  %v1146_v42 = vld [vmem:[%s1695_s0 + $0x84] sm:$0xf]  ;;  %v989_v44 = vor.u32 %v1147_v41, %v988_v40 }
  0x43   :  { %717 = vmatpush.msra.mxu2 %v692_v16  ;;  %v993_v46 = vor.u32 %v1146_v42, %v990_v43 }
  0x44   :  { %1274 = vmatpush.msra.mxu3 %v701_v62 }
  0x45   :  { %718 = vmatpush.msra.mxu2 %v691_v17 }
  0x46   :  { %1275 = vmatpush.msra.mxu3 %v700_v63 }
  0x47   :  { %719 = vmatpush.msra.mxu2 %v690_v19 }
  0x48   :  { %1276 = vmatpush.msra.mxu3 %v699_v0 }
  0x49   :  { %720 = vmatpush.msra.mxu2 %v689_v25 }
  0x4a   :  { %1277 = vmatpush.msra.mxu3 %v698_v1 }
  0x4b   :  { %721 = vmatpush.msra.mxu2 %v688_v29 }
  0x4c   :  { %1278 = vmatpush.msra.mxu3 %v697_v6  ;;  %v1006_v6 = vld [vmem:[%s1695_s0 + $0xa8] sm:$0xf0] }
  0x4d   :  { %722 = vmatpush.msra.mxu2 %v687_v30 }
  0x4e   :  { %1279 = vmatpush.msra.mxu3 %v696_v9 }
  0x50   :  { %1280 = vmatpush.msra.mxu3 %v695_v13 }
  0x51   :  { %433 = vmatmul.bf16.gmra.mxu0 %v949_v49  ;;  %493 = vmatmul.bf16.gmra.mxu3 %v1045_v50 }
  0x52   :  { %522 = vmatmul.bf16.gmra.mxu1 %v953_v51  ;;  %1281 = vmatpush.msra.mxu3 %v694_v14 }
  0x54   :  { %1282 = vmatpush.msra.mxu3 %v693_v15 }
  0x56   :  { %1283 = vmatpush.msra.mxu3 %v692_v16 }
  0x58   :  { %1284 = vmatpush.msra.mxu3 %v691_v17  ;;  %v1012_v17 = vld [vmem:[%s1695_s0 + $0xb0] sm:$0xf] }
  0x59   :  { %v1013_v22 = vor.u32 %v1153_v18, %v1012_v17 }
  0x5a   :  { %1285 = vmatpush.msra.mxu3 %v690_v19  ;;  %v1152_v19 = vld [vmem:[%s1695_s0 + $0xb4] sm:$0xf] }
  0x5b   :  { %v1017_v24 = vor.u32 %v1152_v19, %v1014_v20 }
  0x5c   :  { %1286 = vmatpush.msra.mxu3 %v689_v25 }
  0x5e   :  { %1287 = vmatpush.msra.mxu3 %v688_v29 }
  0x60   :  { %1288 = vmatpush.msra.mxu3 %v687_v30 }
  0x61   :  { %438 = vmatmul.bf16.gmra.mxu0 %v957_v58  ;;  %567 = vmatmul.bf16.vlgmr.msrb.gmra.mxu3 %v1025_v59  ;;  %v997_v58 = vor.u32 %v1149_v54, %v996_v53 }
  0x62   :  { %527 = vmatmul.bf16.gmra.mxu1 %v961_v60  ;;  %v1001_v60 = vor.u32 %v1148_v55, %v998_v56 }
  0x71   :  { %443 = vmatmul.bf16.gmra.mxu0 %v965_v10  ;;  %572 = vmatmul.bf16.gmra.mxu3 %v1033_v11  ;;  %v1009_v10 = vor.u32 %v1150_v5, %v1006_v6 }
  0x72   :  { %532 = vmatmul.bf16.gmra.mxu1 %v969_v12 }
  0x81   :  { %448 = vmatmul.bf16.gmra.mxu0 %v973_v26  ;;  %577 = vmatmul.bf16.gmra.mxu3 %v1041_v27 }
  0x82   :  { %537 = vmatmul.bf16.gmra.mxu1 %v977_v28 }
  0x91   :  { %453 = vmatmul.bf16.gmra.mxu0 %v981_v37  ;;  %582 = vmatmul.bf16.gmra.mxu3 %v1049_v38 }
  0x92   :  { %542 = vmatmul.bf16.gmra.mxu1 %v985_v39 }
  0x9e   :  { %v419_v45 = vpop.f32.mrf.mxu0 }
  0x9f   :  { %v508_v47 = vpop.f32.mrf.mxu1 }
  0xa0   :  { %v509_v48 = vadd.f32 %v508_v47, %v419_v45 }
  0xa1   :  { %458 = vmatmul.bf16.gmra.mxu0 %v989_v44 }
  0xa2   :  { %547 = vmatmul.bf16.gmra.mxu1 %v993_v46  ;;  %723 = vmatmul.f32.vlgmr.msra.gmra.mxu2 %v509_v48 }
  0xa4   :  { %v1567_v49 = vpop.f32.mrf.mxu3 }
  0xa6   :  { %v421_v50 = vpop.f32.mrf.mxu0 }
  0xa7   :  { %v510_v51 = vpop.f32.mrf.mxu1 }
  0xa8   :  { %v511_v52 = vadd.f32 %v510_v51, %v421_v50 }
  0xaa   :  { %726 = vmatmul.f32.gmra.mxu2 %v511_v52 }
  0xac   :  { %v1581_v57 = vpop.f32.mrf.mxu3 }
  0xae   :  { %v424_v59 = vpop.f32.mrf.mxu0 }
  0xaf   :  { %v513_v61 = vpop.f32.mrf.mxu1 }
  0xb0   :  { %v514_v62 = vadd.f32 %v513_v61, %v424_v59 }
  0xb1   :  { %463 = vmatmul.bf16.gmra.mxu0 %v997_v58 }
  0xb2   :  { %552 = vmatmul.bf16.gmra.mxu1 %v1001_v60  ;;  %729 = vmatmul.f32.gmra.mxu2 %v514_v62 }
  0xb4   :  { %v484_v63 = vpop.f32.mrf.mxu3 }
  0xb6   :  { %v426_v0 = vpop.f32.mrf.mxu0 }
  0xb7   :  { %v515_v1 = vpop.f32.mrf.mxu1 }
  0xb8   :  { %v516_v2 = vadd.f32 %v515_v1, %v426_v0 }
  0xba   :  { %732 = vmatmul.f32.gmra.mxu2 %v516_v2 }
  0xbc   :  { %v486_v7 = vpop.f32.mrf.mxu3 }
  0xbe   :  { %v429_v9 = vpop.f32.mrf.mxu0 }
  0xbf   :  { %v518_v11 = vpop.f32.mrf.mxu1 }
  0xc0   :  { %v519_v12 = vadd.f32 %v518_v11, %v429_v9 }
  0xc1   :  { %468 = vmatmul.bf16.gmra.mxu0 %v1005_v8 }
  0xc2   :  { %557 = vmatmul.bf16.gmra.mxu1 %v1009_v10  ;;  %735 = vmatmul.f32.gmra.mxu2 %v519_v12 }
  0xc4   :  { %v489_v13 = vpop.f32.mrf.mxu3 }
  0xc6   :  { %v431_v14 = vpop.f32.mrf.mxu0 }
  0xc7   :  { %v520_v15 = vpop.f32.mrf.mxu1 }
  0xc8   :  { %v521_v16 = vadd.f32 %v520_v15, %v431_v14  ;;  %v1612_v14 = vld [vmem:[%s1697_s3] ss:$0 sm:$0xff] }
  0xca   :  { %738 = vmatmul.f32.gmra.mxu2 %v521_v16 }
  0xcc   :  { %v491_v21 = vpop.f32.mrf.mxu3 }
  0xce   :  { %v434_v23 = vpop.f32.mrf.mxu0 }
  0xcf   :  { %v523_v25 = vpop.f32.mrf.mxu1 }
  0xd0   :  { %v524_v26 = vadd.f32 %v523_v25, %v434_v23 }
  0xd1   :  { %473 = vmatmul.bf16.gmra.mxu0 %v1013_v22 }
  0xd2   :  { %562 = vmatmul.bf16.gmra.mxu1 %v1017_v24  ;;  %741 = vmatmul.f32.gmra.mxu2 %v524_v26 }
  0xd4   :  { %v494_v27 = vpop.f32.mrf.mxu3 }
  0xd6   :  { %v436_v28 = vpop.f32.mrf.mxu0 }
  0xd7   :  { %v525_v29 = vpop.f32.mrf.mxu1 }
  0xd8   :  { %v526_v30 = vadd.f32 %v525_v29, %v436_v28 }
  0xda   :  { %744 = vmatmul.f32.gmra.mxu2 %v526_v30 }
  0xdc   :  { %v496_v31 = vpop.f32.mrf.mxu3 }
  0xde   :  { %v439_v32 = vpop.f32.mrf.mxu0 }
  0xdf   :  { %v528_v33 = vpop.f32.mrf.mxu1 }
  0xe0   :  { %v529_v34 = vadd.f32 %v528_v33, %v439_v32 }
  0xe2   :  { %747 = vmatmul.f32.gmra.mxu2 %v529_v34 }
  0xe4   :  { %v568_v35 = vpop.f32.mrf.mxu3 }
  0xe5   :  { %v569_v36 = vadd.f32 %v568_v35, %v1567_v49 }
  0xe6   :  { %v441_v37 = vpop.f32.mrf.mxu0 }
  0xe7   :  { %v530_v38 = vpop.f32.mrf.mxu1  ;;  %795 = vmatmul.f32.vlgmr.msra.gmra.mxu3 %v569_v36 }
  0xe8   :  { %v531_v39 = vadd.f32 %v530_v38, %v441_v37 }
  0xea   :  { %750 = vmatmul.f32.gmra.mxu2 %v531_v39 }
  0xec   :  { %v570_v40 = vpop.f32.mrf.mxu3 }
  0xed   :  { %v571_v41 = vadd.f32 %v570_v40, %v1581_v57 }
  0xee   :  { %v444_v42 = vpop.f32.mrf.mxu0 }
  0xef   :  { %v533_v43 = vpop.f32.mrf.mxu1  ;;  %798 = vmatmul.f32.gmra.mxu3 %v571_v41 }
  0xf0   :  { %v534_v44 = vadd.f32 %v533_v43, %v444_v42 }
  0xf2   :  { %753 = vmatmul.f32.gmra.mxu2 %v534_v44 }
  0xf4   :  { %v573_v45 = vpop.f32.mrf.mxu3 }
  0xf5   :  { %v574_v46 = vadd.f32 %v573_v45, %v484_v63 }
  0xf6   :  { %v446_v47 = vpop.f32.mrf.mxu0 }
  0xf7   :  { %v535_v48 = vpop.f32.mrf.mxu1  ;;  %801 = vmatmul.f32.gmra.mxu3 %v574_v46 }
  0xf8   :  { %v536_v50 = vadd.f32 %v535_v48, %v446_v47 }
  0xfa   :  { %756 = vmatmul.f32.gmra.mxu2 %v536_v50 }
  0xfc   :  { %v575_v49 = vpop.f32.mrf.mxu3 }
  0xfd   :  { %v576_v51 = vadd.f32 %v575_v49, %v486_v7 }
  0xfe   :  { %v449_v52 = vpop.f32.mrf.mxu0 }
  0xff   :  { %v538_v53 = vpop.f32.mrf.mxu1  ;;  %804 = vmatmul.f32.gmra.mxu3 %v576_v51 }
 0x100   :  { %v539_v54 = vadd.f32 %v538_v53, %v449_v52 }
 0x102   :  { %759 = vmatmul.f32.gmra.mxu2 %v539_v54 }
 0x104   :  { %v578_v55 = vpop.f32.mrf.mxu3 }
 0x105   :  { %v579_v56 = vadd.f32 %v578_v55, %v489_v13 }
 0x106   :  { %v451_v57 = vpop.f32.mrf.mxu0 }
 0x107   :  { %v540_v58 = vpop.f32.mrf.mxu1  ;;  %807 = vmatmul.f32.gmra.mxu3 %v579_v56 }
 0x108   :  { %v541_v59 = vadd.f32 %v540_v58, %v451_v57 }
 0x10a   :  { %762 = vmatmul.f32.gmra.mxu2 %v541_v59 }
 0x10c   :  { %v580_v60 = vpop.f32.mrf.mxu3 }
 0x10d   :  { %v581_v61 = vadd.f32 %v580_v60, %v491_v21 }
 0x10e   :  { %v454_v62 = vpop.f32.mrf.mxu0 }
 0x10f   :  { %v543_v63 = vpop.f32.mrf.mxu1  ;;  %810 = vmatmul.f32.gmra.mxu3 %v581_v61 }
 0x110   :  { %v544_v0 = vadd.f32 %v543_v63, %v454_v62 }
 0x112   :  { %765 = vmatmul.f32.gmra.mxu2 %v544_v0 }
 0x114   :  { %v583_v1 = vpop.f32.mrf.mxu3 }
 0x115   :  { %v584_v2 = vadd.f32 %v583_v1, %v494_v27 }
 0x116   :  { %v456_v3 = vpop.f32.mrf.mxu0 }
 0x117   :  { %v545_v4 = vpop.f32.mrf.mxu1  ;;  %813 = vmatmul.f32.gmra.mxu3 %v584_v2 }
 0x118   :  { %v546_v5 = vadd.f32 %v545_v4, %v456_v3 }
 0x11a   :  { %768 = vmatmul.f32.gmra.mxu2 %v546_v5 }
 0x11c   :  { %v585_v6 = vpop.f32.mrf.mxu3 }
 0x11d   :  { %v586_v7 = vadd.f32 %v585_v6, %v496_v31 }
 0x11e   :  { %v459_v8 = vpop.f32.mrf.mxu0 }
 0x11f   :  { %v548_v9 = vpop.f32.mrf.mxu1  ;;  %816 = vmatmul.f32.gmra.mxu3 %v586_v7 }
 0x120   :  { %v549_v10 = vadd.f32 %v548_v9, %v459_v8 }
 0x122   :  { %771 = vmatmul.f32.gmra.mxu2 %v549_v10 }
 0x125   :  { %v724_v11 = vpop.f32.mrf.mxu2 }
 0x126   :  { %v461_v12 = vpop.f32.mrf.mxu0  ;;  %v725_v16 = vadd.f32 %v1612_v14, %v724_v11 }
 0x127   :  { %v550_v13 = vpop.f32.mrf.mxu1 }
 0x128   :  { %v551_v15 = vadd.f32 %v550_v13, %v461_v12  ;;  %v820_v21 = vmax.f32 %v725_v16, 0.0 }
 0x12a   :  { %774 = vmatmul.f32.gmra.mxu2 %v551_v15 }
 0x12d   :  { %v727_v17 = vpop.f32.mrf.mxu2 }
 0x12e   :  { %v728_v18 = vadd.f32 %v1612_v14, %v727_v17  ;;  %v464_v19 = vpop.f32.mrf.mxu0 }
 0x12f   :  { %v553_v20 = vpop.f32.mrf.mxu1 }
 0x130   :  { %v821_v22 = vmax.f32 %v728_v18, 0.0  ;;  %v554_v23 = vadd.f32 %v553_v20, %v464_v19 }
 0x132   :  { %v1165_v24 = vpack.c.bf16 %v821_v22, %v820_v21  ;;  %777 = vmatmul.f32.gmra.mxu2 %v554_v23 }
 0x134   :  { %1166 = vst [vmem:[%s1698_s4] sm:$0xff] %v1165_v24  }
 0x135   :  { %v730_v25 = vpop.f32.mrf.mxu2 }
 0x136   :  { %v466_v26 = vpop.f32.mrf.mxu0  ;;  %v731_v29 = vadd.f32 %v1612_v14, %v730_v25 }
 0x137   :  { %v555_v27 = vpop.f32.mrf.mxu1 }
 0x138   :  { %v556_v28 = vadd.f32 %v555_v27, %v466_v26  ;;  %v822_v34 = vmax.f32 %v731_v29, 0.0 }
 0x13a   :  { %780 = vmatmul.f32.gmra.mxu2 %v556_v28 }
 0x13d   :  { %v733_v30 = vpop.f32.mrf.mxu2 }
 0x13e   :  { %v734_v31 = vadd.f32 %v1612_v14, %v733_v30  ;;  %v469_v32 = vpop.f32.mrf.mxu0 }
 0x13f   :  { %v558_v33 = vpop.f32.mrf.mxu1 }
 0x140   :  { %v823_v35 = vmax.f32 %v734_v31, 0.0  ;;  %v559_v36 = vadd.f32 %v558_v33, %v469_v32 }
 0x142   :  { %v1170_v37 = vpack.c.bf16 %v823_v35, %v822_v34  ;;  %783 = vmatmul.f32.gmra.mxu2 %v559_v36 }
 0x144   :  { %1242 = vst [vmem:[%s1698_s4 + $0x8] sm:$0xff] %v1170_v37  }
 0x145   :  { %v736_v38 = vpop.f32.mrf.mxu2 }
 0x146   :  { %v471_v39 = vpop.f32.mrf.mxu0  ;;  %v737_v42 = vadd.f32 %v1612_v14, %v736_v38 }
 0x147   :  { %v560_v40 = vpop.f32.mrf.mxu1 }
 0x148   :  { %v561_v41 = vadd.f32 %v560_v40, %v471_v39  ;;  %v824_v47 = vmax.f32 %v737_v42, 0.0 }
 0x14a   :  { %786 = vmatmul.f32.gmra.mxu2 %v561_v41 }
 0x14d   :  { %v739_v43 = vpop.f32.mrf.mxu2 }
 0x14e   :  { %v740_v44 = vadd.f32 %v1612_v14, %v739_v43  ;;  %v474_v45 = vpop.f32.mrf.mxu0 }
 0x14f   :  { %v563_v46 = vpop.f32.mrf.mxu1 }
 0x150   :  { %v825_v48 = vmax.f32 %v740_v44, 0.0  ;;  %v564_v50 = vadd.f32 %v563_v46, %v474_v45 }
 0x152   :  { %v1175_v49 = vpack.c.bf16 %v825_v48, %v824_v47  ;;  %789 = vmatmul.f32.gmra.mxu2 %v564_v50 }
 0x154   :  { %1243 = vst [vmem:[%s1698_s4 + $0x10] sm:$0xff] %v1175_v49  }
 0x155   :  { %v742_v51 = vpop.f32.mrf.mxu2 }
 0x156   :  { %v476_v52 = vpop.f32.mrf.mxu0  ;;  %v743_v55 = vadd.f32 %v1612_v14, %v742_v51 }
 0x157   :  { %v565_v53 = vpop.f32.mrf.mxu1 }
 0x158   :  { %v566_v54 = vadd.f32 %v565_v53, %v476_v52  ;;  %v826_v58 = vmax.f32 %v743_v55, 0.0 }
 0x15a   :  { %792 = vmatmul.f32.gmra.mxu2 %v566_v54 }
 0x15d   :  { %v745_v56 = vpop.f32.mrf.mxu2 }
 0x15e   :  { %v746_v57 = vadd.f32 %v1612_v14, %v745_v56 }
 0x160   :  { %v827_v59 = vmax.f32 %v746_v57, 0.0 }
 0x162   :  { %v1180_v60 = vpack.c.bf16 %v827_v59, %v826_v58 }
 0x164   :  { %1244 = vst [vmem:[%s1698_s4 + $0x18] sm:$0xff] %v1180_v60  }
 0x165   :  { %v748_v61 = vpop.f32.mrf.mxu2 }
 0x166   :  { %v749_v63 = vadd.f32 %v1612_v14, %v748_v61 }
 0x168   :  { %v828_v2 = vmax.f32 %v749_v63, 0.0 }
 0x16a   :  { %v796_v62 = vpop.f32.mrf.mxu3 }
 0x16b   :  { %v797_v4 = vadd.f32 %v1612_v14, %v796_v62 }
 0x16d   :  { %v751_v0 = vpop.f32.mrf.mxu2  ;;  %v844_v8 = vmax.f32 %v797_v4, 0.0 }
 0x16e   :  { %v752_v1 = vadd.f32 %v1612_v14, %v751_v0 }
 0x170   :  { %v829_v3 = vmax.f32 %v752_v1, 0.0 }
 0x172   :  { %v1185_v5 = vpack.c.bf16 %v829_v3, %v828_v2  ;;  %v799_v6 = vpop.f32.mrf.mxu3 }
 0x173   :  { %v800_v7 = vadd.f32 %v1612_v14, %v799_v6 }
 0x174   :  { %1245 = vst [vmem:[%s1698_s4 + $0x20] sm:$0xff] %v1185_v5  }
 0x175   :  { %v845_v9 = vmax.f32 %v800_v7, 0.0  ;;  %v754_v10 = vpop.f32.mrf.mxu2 }
 0x176   :  { %v755_v13 = vadd.f32 %v1612_v14, %v754_v10 }
 0x177   :  { %v1225_v11 = vpack.c.bf16 %v845_v9, %v844_v8 }
 0x178   :  { %v830_v17 = vmax.f32 %v755_v13, 0.0 }
 0x179   :  { %1253 = vst [vmem:[%s1698_s4 + $0x60] sm:$0xff] %v1225_v11  }
 0x17a   :  { %v802_v12 = vpop.f32.mrf.mxu3 }
 0x17b   :  { %v803_v19 = vadd.f32 %v1612_v14, %v802_v12 }
 0x17d   :  { %v757_v15 = vpop.f32.mrf.mxu2  ;;  %v846_v23 = vmax.f32 %v803_v19, 0.0 }
 0x17e   :  { %v758_v16 = vadd.f32 %v1612_v14, %v757_v15 }
 0x180   :  { %v831_v18 = vmax.f32 %v758_v16, 0.0 }
 0x182   :  { %v1190_v20 = vpack.c.bf16 %v831_v18, %v830_v17  ;;  %v805_v21 = vpop.f32.mrf.mxu3 }
 0x183   :  { %v806_v22 = vadd.f32 %v1612_v14, %v805_v21 }
 0x184   :  { %1246 = vst [vmem:[%s1698_s4 + $0x28] sm:$0xff] %v1190_v20  }
 0x185   :  { %v847_v24 = vmax.f32 %v806_v22, 0.0  ;;  %v760_v25 = vpop.f32.mrf.mxu2 }
 0x186   :  { %v761_v28 = vadd.f32 %v1612_v14, %v760_v25 }
 0x187   :  { %v1230_v26 = vpack.c.bf16 %v847_v24, %v846_v23 }
 0x188   :  { %v832_v31 = vmax.f32 %v761_v28, 0.0 }
 0x189   :  { %1254 = vst [vmem:[%s1698_s4 + $0x68] sm:$0xff] %v1230_v26  }
 0x18a   :  { %v808_v27 = vpop.f32.mrf.mxu3 }
 0x18b   :  { %v809_v33 = vadd.f32 %v1612_v14, %v808_v27 }
 0x18d   :  { %v763_v29 = vpop.f32.mrf.mxu2  ;;  %v848_v37 = vmax.f32 %v809_v33, 0.0 }
 0x18e   :  { %v764_v30 = vadd.f32 %v1612_v14, %v763_v29 }
 0x190   :  { %v833_v32 = vmax.f32 %v764_v30, 0.0 }
 0x192   :  { %v1195_v34 = vpack.c.bf16 %v833_v32, %v832_v31  ;;  %v811_v35 = vpop.f32.mrf.mxu3 }
 0x193   :  { %v812_v36 = vadd.f32 %v1612_v14, %v811_v35 }
 0x194   :  { %1247 = vst [vmem:[%s1698_s4 + $0x30] sm:$0xff] %v1195_v34  }
 0x195   :  { %v849_v38 = vmax.f32 %v812_v36, 0.0  ;;  %v766_v39 = vpop.f32.mrf.mxu2 }
 0x196   :  { %v767_v42 = vadd.f32 %v1612_v14, %v766_v39 }
 0x197   :  { %v1235_v40 = vpack.c.bf16 %v849_v38, %v848_v37 }
 0x198   :  { %v834_v45 = vmax.f32 %v767_v42, 0.0 }
 0x199   :  { %1255 = vst [vmem:[%s1698_s4 + $0x70] sm:$0xff] %v1235_v40  }
 0x19a   :  { %v814_v41 = vpop.f32.mrf.mxu3 }
 0x19b   :  { %v815_v47 = vadd.f32 %v1612_v14, %v814_v41 }
 0x19d   :  { %v769_v43 = vpop.f32.mrf.mxu2  ;;  %v850_v51 = vmax.f32 %v815_v47, 0.0 }
 0x19e   :  { %v770_v44 = vadd.f32 %v1612_v14, %v769_v43 }
 0x1a0   :  { %v835_v46 = vmax.f32 %v770_v44, 0.0 }
 0x1a2   :  { %v1200_v48 = vpack.c.bf16 %v835_v46, %v834_v45  ;;  %v817_v50 = vpop.f32.mrf.mxu3 }
 0x1a3   :  { %v818_v49 = vadd.f32 %v1612_v14, %v817_v50 }
 0x1a4   :  { %1248 = vst [vmem:[%s1698_s4 + $0x38] sm:$0xff] %v1200_v48  }
 0x1a5   :  { %v851_v52 = vmax.f32 %v818_v49, 0.0  ;;  %v772_v53 = vpop.f32.mrf.mxu2 }
 0x1a6   :  { %v773_v55 = vadd.f32 %v1612_v14, %v772_v53 }
 0x1a7   :  { %v1240_v54 = vpack.c.bf16 %v851_v52, %v850_v51 }
 0x1a8   :  { %v836_v58 = vmax.f32 %v773_v55, 0.0 }
 0x1a9   :  { %1256 = vst [vmem:[%s1698_s4 + $0x78] sm:$0xff] %v1240_v54  }
 0x1ad   :  { %v775_v56 = vpop.f32.mrf.mxu2 }
 0x1ae   :  { %v776_v57 = vadd.f32 %v1612_v14, %v775_v56 }
 0x1b0   :  { %v837_v59 = vmax.f32 %v776_v57, 0.0 }
 0x1b2   :  { %v1205_v60 = vpack.c.bf16 %v837_v59, %v836_v58 }
 0x1b4   :  { %1249 = vst [vmem:[%s1698_s4 + $0x40] sm:$0xff] %v1205_v60  }
 0x1b5   :  { %v778_v61 = vpop.f32.mrf.mxu2 }
 0x1b6   :  { %v779_v62 = vadd.f32 %v1612_v14, %v778_v61 }
 0x1b8   :  { %v838_v1 = vmax.f32 %v779_v62, 0.0 }
 0x1bd   :  { %v781_v63 = vpop.f32.mrf.mxu2 }
 0x1be   :  { %v782_v0 = vadd.f32 %v1612_v14, %v781_v63 }
 0x1c0   :  { %v839_v2 = vmax.f32 %v782_v0, 0.0 }
 0x1c2   :  { %v1210_v3 = vpack.c.bf16 %v839_v2, %v838_v1 }
 0x1c4   :  { %1250 = vst [vmem:[%s1698_s4 + $0x48] sm:$0xff] %v1210_v3  }
 0x1c5   :  { %v784_v4 = vpop.f32.mrf.mxu2 }
 0x1c6   :  { %v785_v5 = vadd.f32 %v1612_v14, %v784_v4 }
 0x1c8   :  { %v840_v8 = vmax.f32 %v785_v5, 0.0 }
 0x1cd   :  { %v787_v6 = vpop.f32.mrf.mxu2 }
 0x1ce   :  { %v788_v7 = vadd.f32 %v1612_v14, %v787_v6 }
 0x1d0   :  { %v841_v9 = vmax.f32 %v788_v7, 0.0 }
 0x1d2   :  { %v1215_v10 = vpack.c.bf16 %v841_v9, %v840_v8 }
 0x1d4   :  { %1251 = vst [vmem:[%s1698_s4 + $0x50] sm:$0xff] %v1215_v10  }
 0x1d5   :  { %v790_v11 = vpop.f32.mrf.mxu2 }
 0x1d6   :  { %v791_v12 = vadd.f32 %v1612_v14, %v790_v11 }
 0x1d8   :  { %v842_v16 = vmax.f32 %v791_v12, 0.0 }
 0x1dd   :  { %v793_v13 = vpop.f32.mrf.mxu2 }
 0x1de   :  { %v794_v15 = vadd.f32 %v1612_v14, %v793_v13 }
 0x1e0   :  { %v843_v17 = vmax.f32 %v794_v15, 0.0 }
 0x1e2   :  { %v1220_v18 = vpack.c.bf16 %v843_v17, %v842_v16 }
 0x1e4   :  { %1252 = vst [vmem:[%s1698_s4 + $0x58] sm:$0xff] %v1220_v18  }

</bundles_post_ra>
